<compile_context>
chip_gen: v7x
topology: tpu7x:2x2x1
jax: 0.10.0
libtpu: 0.0.40
codegen_flags: <defaults>
</compile_context>

<pallas_src>
import functools

import jax
import jax.numpy as jnp
from jax.experimental import pallas as pl
from jax.experimental.pallas import tpu as pltpu

N_NODES = 8          # small synthetic graph
EMB_DIM = 768        # self.n_node_features / embedding_dimension in the module


def _sgn_kernel(x_ref, wu_ref, b_ref, a_ref, mask_ref, out_ref):
    """One aggregator per grid step: out = relu(A @ (X@W) + X@U + b) * mask."""
    d = out_ref.shape[-1]

    # Single MXU matmul for both projections: [N, D] @ [D, 2D] -> [N, 2D] (f32 acc).
    proj = jnp.dot(x_ref[...], wu_ref[0],
                   preferred_element_type=jnp.float32)
    xw = proj[:, :d]          # goes through neighbor aggregation
    xu = proj[:, d:]          # direct (self) term

    # Neighbor aggregation via dense adjacency matmul (tiny: N x N x D), f32.
    agg = jnp.dot(a_ref[0], xw, preferred_element_type=jnp.float32)

    # Epilogue entirely in f32 (bias add + relu + mask).
    h = jnp.maximum(agg + xu + b_ref[0], 0.0)
    out_ref[0] = (h * mask_ref[0]).astype(out_ref.dtype)


def tree_aggregate_fused(x_bf16, wu_bf16, b, adj, mask):
    """Runs both (root, leaf) aggregators in one pallas_call.

    x_bf16:  [N, D]        bf16
    wu_bf16: [2, D, 2D]    bf16   (concat of W and U per aggregator)
    b:       [2, 1, D]     f32
    adj:     [2, N, N]     f32
    mask:    [2, N, 1]     f32
    returns: [2, N, D]     f32
    """
    n, d = x_bf16.shape

    grid_spec = pltpu.PrefetchScalarGridSpec(
        num_scalar_prefetch=0,
        grid=(2,),
        in_specs=[
            pl.BlockSpec((n, d), lambda g: (0, 0)),            # X (shared)
            pl.BlockSpec((1, d, 2 * d), lambda g: (g, 0, 0)),  # [W|U]
            pl.BlockSpec((1, 1, d), lambda g: (g, 0, 0)),      # bias
            pl.BlockSpec((1, n, n), lambda g: (g, 0, 0)),      # adjacency
            pl.BlockSpec((1, n, 1), lambda g: (g, 0, 0)),      # mask
        ],
        out_specs=pl.BlockSpec((1, n, d), lambda g: (g, 0, 0)),
    )
    return pl.pallas_call(
        _sgn_kernel,
        out_shape=jax.ShapeDtypeStruct((2, n, d), jnp.float32),
        grid_spec=grid_spec,
        compiler_params=pltpu.CompilerParams(
            dimension_semantics=("parallel",)),
    )(x_bf16, wu_bf16, b, adj, mask)


def init_params(key, d):
    """Deterministic parameter init for the two TreeAggregators."""
    ks = jax.random.split(key, 6)
    scale = 1.0 / jnp.sqrt(d)
    params = {
        "root": {
            "w": jax.random.normal(ks[0], (d, d), jnp.float32) * scale,
            "u": jax.random.normal(ks[1], (d, d), jnp.float32) * scale,
            "b": jax.random.normal(ks[2], (d,), jnp.float32) * 0.01,
        },
        "leaf": {
            "w": jax.random.normal(ks[3], (d, d), jnp.float32) * scale,
            "u": jax.random.normal(ks[4], (d, d), jnp.float32) * scale,
            "b": jax.random.normal(ks[5], (d,), jnp.float32) * 0.01,
        },
    }
    return params


@functools.partial(jax.jit, static_argnames=("n_nodes",))
def sgn_forward(x, sources, destinations, params, *, n_nodes):
    """Mirrors SGN.forward: build leaf/root graphs + masks, run both aggregators."""
    d = x.shape[1]

    # sources / destinations are 1-indexed in the reference; convert to 0-based.
    src = sources - 1
    dst = destinations - 1

    # Dense adjacency of graph_leaf: A_leaf[dst, src] = 1 (message src -> dst).
    adj_leaf = jnp.zeros((n_nodes, n_nodes), jnp.float32).at[dst, src].add(1.0)
    adj_root = adj_leaf.T  # dgl.reverse

    # mask = (out_degrees == 0).float()  for each graph.
    out_deg_leaf = adj_leaf.sum(axis=0)   # out-degree of node j in leaf graph
    out_deg_root = adj_root.sum(axis=0)   # out-degree in reversed graph
    mask_leaf = (out_deg_leaf == 0).astype(jnp.float32).reshape(n_nodes, 1)
    mask_root = (out_deg_root == 0).astype(jnp.float32).reshape(n_nodes, 1)

    # Stack per-aggregator operands: index 0 = root, index 1 = leaf.
    wu = jnp.stack([
        jnp.concatenate([params["root"]["w"], params["root"]["u"]], axis=1),
        jnp.concatenate([params["leaf"]["w"], params["leaf"]["u"]], axis=1),
    ], axis=0).astype(jnp.bfloat16)                       # [2, D, 2D] bf16
    b = jnp.stack([params["root"]["b"].reshape(1, d),
                   params["leaf"]["b"].reshape(1, d)], axis=0)   # [2, 1, D] f32
    adj = jnp.stack([adj_root, adj_leaf], axis=0)                # [2, N, N] f32
    mask = jnp.stack([mask_root, mask_leaf], axis=0)             # [2, N, 1] f32

    out = tree_aggregate_fused(x.astype(jnp.bfloat16), wu, b, adj, mask)
    root_emb, leaf_emb = out[0], out[1]
    return root_emb, leaf_emb


if __name__ == "__main__":
    key = jax.random.PRNGKey(0)
    k_x, k_p = jax.random.split(key)

    # Node features (data.x): [N, 768].
    x = jax.random.normal(k_x, (N_NODES, EMB_DIM), jnp.float32)

    # A small tree / chain, 1-indexed as in the reference forward().
    sources = jnp.array([1, 2, 3, 4, 5, 6, 7], dtype=jnp.int32)
    destinations = jnp.array([2, 3, 4, 5, 6, 7, 8], dtype=jnp.int32)

    params = init_params(k_p, EMB_DIM)

    root_emb, leaf_emb = sgn_forward(x, sources, destinations, params,
                                     n_nodes=N_NODES)
    jax.block_until_ready((root_emb, leaf_emb))

    assert root_emb.shape == (N_NODES, EMB_DIM)
    assert leaf_emb.shape == (N_NODES, EMB_DIM)
    print("KERNEL_OK")
</pallas_src>

<mosaic_0001>
module attributes {stable_mosaic.version = 11 : i64} {
  func.func @_sgn_kernel(%arg0: i32, %arg1: memref<8x768xbf16, #tpu.memory_space<vmem>>, %arg2: memref<1x768x1536xbf16, #tpu.memory_space<vmem>>, %arg3: memref<1x1x768xf32, #tpu.memory_space<vmem>>, %arg4: memref<1x8x8xf32, #tpu.memory_space<vmem>>, %arg5: memref<1x8x1xf32, #tpu.memory_space<vmem>>, %arg6: memref<1x8x768xf32, #tpu.memory_space<vmem>>) attributes {dimension_semantics = [#tpu.dimension_semantics<parallel>], iteration_bounds = array<i64: 2>, scalar_prefetch = 0 : i64, scratch_operands = 0 : i64, tpu.core_type = #tpu.core_type<tc>, window_params = [{pipeline_mode = #tpu.pipeline_mode<synchronous>, transform_indices = @transform_0, window_bounds = array<i64: 8, 768>}, {transform_indices = @transform_1, window_bounds = array<i64: 1, 768, 1536>}, {transform_indices = @transform_2, window_bounds = array<i64: 1, 1, 768>}, {transform_indices = @transform_3, window_bounds = array<i64: 1, 8, 8>}, {transform_indices = @transform_4, window_bounds = array<i64: 1, 8, 1>}, {transform_indices = @transform_5, window_bounds = array<i64: 1, 8, 768>}]} {
    %c0 = arith.constant 0 : index
    %c0_0 = arith.constant 0 : index
    %0 = vector.load %arg1[%c0, %c0_0] : memref<8x768xbf16, #tpu.memory_space<vmem>>, vector<8x768xbf16>
    %c0_1 = arith.constant 0 : index
    %c0_2 = arith.constant 0 : index
    %c0_3 = arith.constant 0 : index
    %1 = vector.load %arg2[%c0_1, %c0_2, %c0_3] : memref<1x768x1536xbf16, #tpu.memory_space<vmem>>, vector<1x768x1536xbf16>
    %2 = vector.shape_cast %1 : vector<1x768x1536xbf16> to vector<768x1536xbf16>
    %cst = arith.constant dense<0.000000e+00> : vector<8x1536xf32>
    %3 = tpu.matmul %0, %2, %cst {dimension_numbers = #tpu.dot_dimension_numbers<[1], [0], [0], [1], [0, 0, 1, 1], [], []>} : vector<8x768xbf16>, vector<768x1536xbf16>, vector<8x1536xf32> -> vector<8x1536xf32>
    %4 = vector.extract_strided_slice %3 {offsets = [0, 0], sizes = [8, 768], strides = [1, 1]} : vector<8x1536xf32> to vector<8x768xf32>
    %5 = vector.extract_strided_slice %3 {offsets = [0, 768], sizes = [8, 768], strides = [1, 1]} : vector<8x1536xf32> to vector<8x768xf32>
    %c0_4 = arith.constant 0 : index
    %c0_5 = arith.constant 0 : index
    %c0_6 = arith.constant 0 : index
    %6 = vector.load %arg4[%c0_4, %c0_5, %c0_6] : memref<1x8x8xf32, #tpu.memory_space<vmem>>, vector<1x8x8xf32>
    %7 = vector.shape_cast %6 : vector<1x8x8xf32> to vector<8x8xf32>
    %cst_7 = arith.constant dense<0.000000e+00> : vector<8x768xf32>
    %8 = tpu.matmul %7, %4, %cst_7 {dimension_numbers = #tpu.dot_dimension_numbers<[1], [0], [0], [1], [0, 0, 1, 1], [], []>} : vector<8x8xf32>, vector<8x768xf32>, vector<8x768xf32> -> vector<8x768xf32>
    %9 = arith.addf %8, %5 : vector<8x768xf32>
    %c0_8 = arith.constant 0 : index
    %c0_9 = arith.constant 0 : index
    %c0_10 = arith.constant 0 : index
    %10 = vector.load %arg3[%c0_8, %c0_9, %c0_10] : memref<1x1x768xf32, #tpu.memory_space<vmem>>, vector<1x1x768xf32>
    %11 = vector.shape_cast %10 : vector<1x1x768xf32> to vector<1x768xf32>
    %12 = vector.broadcast %11 : vector<1x768xf32> to vector<8x768xf32>
    %13 = arith.addf %9, %12 : vector<8x768xf32>
    %cst_11 = arith.constant 0.000000e+00 : f32
    %14 = vector.broadcast %cst_11 : f32 to vector<8x768xf32>
    %15 = arith.maximumf %13, %14 : vector<8x768xf32>
    %c0_12 = arith.constant 0 : index
    %c0_13 = arith.constant 0 : index
    %c0_14 = arith.constant 0 : index
    %16 = vector.load %arg5[%c0_12, %c0_13, %c0_14] : memref<1x8x1xf32, #tpu.memory_space<vmem>>, vector<1x8x1xf32>
    %17 = vector.shape_cast %16 : vector<1x8x1xf32> to vector<8x1xf32>
    %18 = vector.broadcast %17 : vector<8x1xf32> to vector<8x768xf32>
    %19 = arith.mulf %15, %18 : vector<8x768xf32>
    %c0_15 = arith.constant 0 : index
    %c0_16 = arith.constant 0 : index
    %c0_17 = arith.constant 0 : index
    %20 = vector.load %arg6[%c0_15, %c0_16, %c0_17] : memref<1x8x768xf32, #tpu.memory_space<vmem>>, vector<1x8x768xf32>
    %21 = vector.shape_cast %20 : vector<1x8x768xf32> to vector<8x768xf32>
    %22 = vector.shape_cast %19 : vector<8x768xf32> to vector<1x8x768xf32>
    tpu.vector_store %arg6[%c0_15, %c0_16, %c0_17], %22 {strides = array<i32>} : memref<1x8x768xf32, #tpu.memory_space<vmem>>, vector<1x8x768xf32>,
    return
  }
  func.func @transform_0(%arg0: i32) -> (i32, i32) {
    %c0_i32 = arith.constant 0 : i32
    %c0_i32_0 = arith.constant 0 : i32
    %c0_i32_1 = arith.constant 0 : i32
    return %c0_i32, %c0_i32_0 : i32, i32
  }
  func.func @transform_1(%arg0: i32) -> (i32, i32, i32) {
    %c0_i32 = arith.constant 0 : i32
    %c0_i32_0 = arith.constant 0 : i32
    %c0_i32_1 = arith.constant 0 : i32
    return %arg0, %c0_i32, %c0_i32_0 : i32, i32, i32
  }
  func.func @transform_2(%arg0: i32) -> (i32, i32, i32) {
    %c0_i32 = arith.constant 0 : i32
    %c0_i32_0 = arith.constant 0 : i32
    %c0_i32_1 = arith.constant 0 : i32
    return %arg0, %c0_i32, %c0_i32_0 : i32, i32, i32
  }
  func.func @transform_3(%arg0: i32) -> (i32, i32, i32) {
    %c0_i32 = arith.constant 0 : i32
    %c0_i32_0 = arith.constant 0 : i32
    %c0_i32_1 = arith.constant 0 : i32
    return %arg0, %c0_i32, %c0_i32_0 : i32, i32, i32
  }
  func.func @transform_4(%arg0: i32) -> (i32, i32, i32) {
    %c0_i32 = arith.constant 0 : i32
    %c0_i32_0 = arith.constant 0 : i32
    %c0_i32_1 = arith.constant 0 : i32
    return %arg0, %c0_i32, %c0_i32_0 : i32, i32, i32
  }
  func.func @transform_5(%arg0: i32) -> (i32, i32, i32) {
    %c0_i32 = arith.constant 0 : i32
    %c0_i32_0 = arith.constant 0 : i32
    %c0_i32_1 = arith.constant 0 : i32
    return %arg0, %c0_i32, %c0_i32_0 : i32, i32, i32
  }
}

</mosaic_0001>

<bundles_post_ra>
// kernel: sgn_forward.1
= control target key start
LH: loop header
LB: loop body
LE: loop exit
PB: predicated region body
PF: predicated region fallthrough
CT: control target
= control target key end

     0   :  { %s6433_s18 = smov 0   ;;  %s7134_s0 = inlined_call_operand.vmem [shape: bf16[8,768], index: 0, kind: input, shape index: {}]   ;;  %s7135_s1 = inlined_call_operand.vmem [shape: bf16[2,768,1536], index: 1, kind: input, shape index: {}]   ;;  %s7136_s2 = inlined_call_operand.vmem [shape: f32[2,1,768], index: 2, kind: input, shape index: {}]   ;;  %s7137_s3 = inlined_call_operand.vmem [shape: f32[2,8,8], index: 3, kind: input, shape index: {}]   ;;  %s7138_s4 = inlined_call_operand.vmem [shape: f32[2,8,1], index: 4, kind: input, shape index: {}]   ;;  %s7139_s5 = inlined_call_operand.vmem [shape: f32[2,8,768], index: 5, kind: output, shape index: {}]  }
   0x1 LB: > { %s4865_s19 = sadd.s32 4294967295, %s6399_s18   ;;  %p4869_p0 = scmp.ge.s32.totalorder %s6399_s18, 1  ;;  %s6399_s18 = sphi %s6433_s18, %s15_s18  }
   0x2   : > { %p214_p1 = scmp.lt.s32.totalorder %s6399_s18, 3 }
   0x4   : > { %p215_p2 = pnand %p4869_p0, %p214_p1 }
   0x5   : > { %p254_p3 = scmp.lt.s32.totalorder (!%p215_p2), %s4865_s19, 1  ;;  %v6444_v0 = vld [vmem:[%s7134_s0] sm:$0xff] (!%p215_p2)  ;;  %vm4495_vm0 = vcmask (!%p215_p2), 64512  }
   0x6   : > { %218 = sbr.rel (%p215_p2) target bundleno = 839 (0x347), region = 40  ;;  %v6448_v1 = vcombine.high (!%p215_p2), %v6444_v0, %v6444_v0 }
   0x8   : > { %3788 = vmatprep.mubr.bf16.mxu0 (!%p215_p2), %v6448_v1  ;;  %3911 = vmatprep.mubr.bf16.mxu1 (!%p215_p2), %v6448_v1 }
   0xd   : > { %s7141_s19 = smov (!%p254_p3, %s4865_s19), 1 }
   0xe   : > { %s5509_s22 = smul.u32 4608, %s7141_s19  ;;  %s4871_s30 = sshll.u32 %s7141_s19, 3 }
   0xf   : > { %s270_s8 = scalar_lea.vmem %s7138_s4, %s4871_s30  ;;  %s266_s11 = scalar_lea.vmem %s7137_s3, %s4871_s30 }
  0x10   : > { %s6458_s25 = scalar_lea.vmem %s7135_s1, %s5509_s22  ;;  %s5510_s12 = smul.u32 6, %s7141_s19 }
  0x11   : > { %v5523_v2 = vld [vmem:[%s6458_s25 + $0x4] ss:$48 sps:$4 sm:$0xff]   ;;  %v5525_v3 = vld [vmem:[%s6458_s25 + $0xc] ss:$48 sps:$4 sm:$0xff]   ;;  %v5527_v4 = vld [vmem:[%s6458_s25] ss:$48 sps:$4 sm:$0xff]  }
  0x12   : > { %3756 = vmatprep.subr.bf16.mxu0 %v5523_v2  ;;  %v5528_v5 = vld [vmem:[%s6458_s25 + $0x8] ss:$48 sps:$4 sm:$0xff]   ;;  %3879 = vmatprep.subr.bf16.mxu1 %v5525_v3  ;;  %v5529_v6 = vld [vmem:[%s6458_s25 + $0x64] ss:$48 sps:$4 sm:$0xff]   ;;  %v5531_v7 = vld [vmem:[%s6458_s25 + $0x6c] ss:$48 sps:$4 sm:$0xff]   ;;  %s262_s15 = scalar_lea.vmem %s7136_s2, %s5510_s12 }
  0x13   : > { %3757 = vmatpush1.bf16.msra.mxu0 %v5527_v4  ;;  %3880 = vmatpush1.bf16.msra.mxu1 %v5528_v5  ;;  %v5533_v8 = vld [vmem:[%s6458_s25 + $0x60] ss:$48 sps:$4 sm:$0xff]   ;;  %v5534_v9 = vld [vmem:[%s6458_s25 + $0x68] ss:$48 sps:$4 sm:$0xff]   ;;  %v5535_v10 = vld [vmem:[%s6458_s25 + $0xc4] ss:$48 sps:$4 sm:$0xff]  }
  0x14   : > { %3758 = vmatprep.subr.bf16.mxu0 %v5529_v6  ;;  %3881 = vmatprep.subr.bf16.mxu1 %v5531_v7  ;;  %v5537_v11 = vld [vmem:[%s6458_s25 + $0xcc] ss:$48 sps:$4 sm:$0xff]   ;;  %v5539_v12 = vld [vmem:[%s6458_s25 + $0xc0] ss:$48 sps:$4 sm:$0xff]   ;;  %v5540_v13 = vld [vmem:[%s6458_s25 + $0xc8] ss:$48 sps:$4 sm:$0xff]  }
  0x15   : > { %v5541_v14 = vld [vmem:[%s6458_s25 + $0x124] ss:$48 sps:$4 sm:$0xff]   ;;  %v5543_v15 = vld [vmem:[%s6458_s25 + $0x12c] ss:$48 sps:$4 sm:$0xff]   ;;  %v5545_v16 = vld [vmem:[%s6458_s25 + $0x120] ss:$48 sps:$4 sm:$0xff]  }
  0x16   : > { %v5546_v17 = vld [vmem:[%s6458_s25 + $0x128] ss:$48 sps:$4 sm:$0xff]   ;;  %v5547_v18 = vld [vmem:[%s6458_s25 + $0x184] ss:$48 sps:$4 sm:$0xff]   ;;  %v5549_v19 = vld [vmem:[%s6458_s25 + $0x18c] ss:$48 sps:$4 sm:$0xff]  }
  0x17   : > { %3759 = vmatpush1.bf16.msra.mxu0 %v5533_v8  ;;  %3882 = vmatpush1.bf16.msra.mxu1 %v5534_v9  ;;  %v5551_v20 = vld [vmem:[%s6458_s25 + $0x180] ss:$48 sps:$4 sm:$0xff]   ;;  %v5552_v21 = vld [vmem:[%s6458_s25 + $0x188] ss:$48 sps:$4 sm:$0xff]   ;;  %v5553_v22 = vld [vmem:[%s6458_s25 + $0x1e4] ss:$48 sps:$4 sm:$0xff]   ;;  %v6530_v8 = vcombine.low %v6444_v0, %v6444_v0 }
  0x18   : > { %3760 = vmatprep.subr.bf16.mxu0 %v5535_v10  ;;  %3883 = vmatprep.subr.bf16.mxu1 %v5537_v11  ;;  %v5555_v23 = vld [vmem:[%s6458_s25 + $0x1ec] ss:$48 sps:$4 sm:$0xff]   ;;  %v5557_v24 = vld [vmem:[%s6458_s25 + $0x1e0] ss:$48 sps:$4 sm:$0xff]   ;;  %v5558_v25 = vld [vmem:[%s6458_s25 + $0x1e8] ss:$48 sps:$4 sm:$0xff]  }
  0x19   : > { %v5559_v26 = vld [vmem:[%s6458_s25 + $0x244] ss:$48 sps:$4 sm:$0xff]   ;;  %v5561_v27 = vld [vmem:[%s6458_s25 + $0x24c] ss:$48 sps:$4 sm:$0xff]   ;;  %v5563_v28 = vld [vmem:[%s6458_s25 + $0x240] ss:$48 sps:$4 sm:$0xff]  }
  0x1a   : > { %v5564_v29 = vld [vmem:[%s6458_s25 + $0x248] ss:$48 sps:$4 sm:$0xff]   ;;  %v5565_v30 = vld [vmem:[%s6458_s25 + $0x2a4] ss:$48 sps:$4 sm:$0xff]   ;;  %v5567_v31 = vld [vmem:[%s6458_s25 + $0x2ac] ss:$48 sps:$4 sm:$0xff]  }
  0x1b   : > { %3761 = vmatpush1.bf16.msra.mxu0 %v5539_v12  ;;  %3884 = vmatpush1.bf16.msra.mxu1 %v5540_v13  ;;  %v5569_v32 = vld [vmem:[%s6458_s25 + $0x2a0] ss:$48 sps:$4 sm:$0xff]   ;;  %v5570_v33 = vld [vmem:[%s6458_s25 + $0x2a8] ss:$48 sps:$4 sm:$0xff]   ;;  %v5571_v34 = vld [vmem:[%s6458_s25 + $0x304] ss:$48 sps:$4 sm:$0xff]  }
  0x1c   : > { %3762 = vmatprep.subr.bf16.mxu0 %v5541_v14  ;;  %3885 = vmatprep.subr.bf16.mxu1 %v5543_v15  ;;  %v5573_v35 = vld [vmem:[%s6458_s25 + $0x30c] ss:$48 sps:$4 sm:$0xff]   ;;  %v5575_v36 = vld [vmem:[%s6458_s25 + $0x300] ss:$48 sps:$4 sm:$0xff]   ;;  %v5576_v37 = vld [vmem:[%s6458_s25 + $0x308] ss:$48 sps:$4 sm:$0xff]  }
  0x1d   : > { %v5577_v38 = vld [vmem:[%s6458_s25 + $0x364] ss:$48 sps:$4 sm:$0xff]   ;;  %v5579_v39 = vld [vmem:[%s6458_s25 + $0x36c] ss:$48 sps:$4 sm:$0xff]   ;;  %v5581_v40 = vld [vmem:[%s6458_s25 + $0x360] ss:$48 sps:$4 sm:$0xff]  }
  0x1e   : > { %v5582_v41 = vld [vmem:[%s6458_s25 + $0x368] ss:$48 sps:$4 sm:$0xff]   ;;  %v5583_v42 = vld [vmem:[%s6458_s25 + $0x3c4] ss:$48 sps:$4 sm:$0xff]   ;;  %v5585_v43 = vld [vmem:[%s6458_s25 + $0x3cc] ss:$48 sps:$4 sm:$0xff]  }
  0x1f   : > { %3763 = vmatpush1.bf16.msra.mxu0 %v5545_v16  ;;  %3886 = vmatpush1.bf16.msra.mxu1 %v5546_v17  ;;  %v5587_v44 = vld [vmem:[%s6458_s25 + $0x3c0] ss:$48 sps:$4 sm:$0xff]   ;;  %v5588_v45 = vld [vmem:[%s6458_s25 + $0x3c8] ss:$48 sps:$4 sm:$0xff]   ;;  %v5589_v46 = vld [vmem:[%s6458_s25 + $0x424] ss:$48 sps:$4 sm:$0xff]  }
  0x20   : > { %3764 = vmatprep.subr.bf16.mxu0 %v5547_v18  ;;  %3887 = vmatprep.subr.bf16.mxu1 %v5549_v19  ;;  %v5591_v47 = vld [vmem:[%s6458_s25 + $0x42c] ss:$48 sps:$4 sm:$0xff]   ;;  %v5593_v48 = vld [vmem:[%s6458_s25 + $0x420] ss:$48 sps:$4 sm:$0xff]   ;;  %v5594_v49 = vld [vmem:[%s6458_s25 + $0x428] ss:$48 sps:$4 sm:$0xff]  }
  0x21   : > { %v5595_v50 = vld [vmem:[%s6458_s25 + $0x484] ss:$48 sps:$4 sm:$0xff]   ;;  %v5597_v51 = vld [vmem:[%s6458_s25 + $0x48c] ss:$48 sps:$4 sm:$0xff]   ;;  %v5599_v52 = vld [vmem:[%s6458_s25 + $0x480] ss:$48 sps:$4 sm:$0xff]  }
  0x22   : > { %v5600_v53 = vld [vmem:[%s6458_s25 + $0x488] ss:$48 sps:$4 sm:$0xff]   ;;  %v5601_v54 = vld [vmem:[%s6458_s25 + $0x4e4] ss:$48 sps:$4 sm:$0xff]   ;;  %v5603_v55 = vld [vmem:[%s6458_s25 + $0x4ec] ss:$48 sps:$4 sm:$0xff]  }
  0x23   : > { %3765 = vmatpush1.bf16.msra.mxu0 %v5551_v20  ;;  %3888 = vmatpush1.bf16.msra.mxu1 %v5552_v21  ;;  %v5605_v56 = vld [vmem:[%s6458_s25 + $0x4e0] ss:$48 sps:$4 sm:$0xff]   ;;  %v5606_v57 = vld [vmem:[%s6458_s25 + $0x4e8] ss:$48 sps:$4 sm:$0xff]   ;;  %v5607_v58 = vld [vmem:[%s6458_s25 + $0x544] ss:$48 sps:$4 sm:$0xff]  }
  0x24   : > { %3766 = vmatprep.subr.bf16.mxu0 %v5553_v22  ;;  %3889 = vmatprep.subr.bf16.mxu1 %v5555_v23  ;;  %v5609_v59 = vld [vmem:[%s6458_s25 + $0x54c] ss:$48 sps:$4 sm:$0xff]   ;;  %v5611_v60 = vld [vmem:[%s6458_s25 + $0x540] ss:$48 sps:$4 sm:$0xff]   ;;  %v5612_v61 = vld [vmem:[%s6458_s25 + $0x548] ss:$48 sps:$4 sm:$0xff]  }
  0x25   : > { %v5613_v62 = vld [vmem:[%s6458_s25 + $0x5a4] ss:$48 sps:$4 sm:$0xff]   ;;  %v5615_v63 = vld [vmem:[%s6458_s25 + $0x5ac] ss:$48 sps:$4 sm:$0xff]   ;;  %v5617_v2 = vld [vmem:[%s6458_s25 + $0x5a0] ss:$48 sps:$4 sm:$0xff]  }
  0x26   : > { %v5618_v3 = vld [vmem:[%s6458_s25 + $0x5a8] ss:$48 sps:$4 sm:$0xff]   ;;  %v5622_v4 = vld [vmem:[%s6458_s25 + $0x604] ss:$48 sps:$4 sm:$0xff]   ;;  %v5625_v5 = vld [vmem:[%s6458_s25 + $0x60c] ss:$48 sps:$4 sm:$0xff]  }
  0x27   : > { %3767 = vmatpush1.bf16.msra.mxu0 %v5557_v24  ;;  %3890 = vmatpush1.bf16.msra.mxu1 %v5558_v25  ;;  %v5620_v6 = vld [vmem:[%s6458_s25 + $0x600] ss:$48 sps:$4 sm:$0xff]   ;;  %v5623_v7 = vld [vmem:[%s6458_s25 + $0x608] ss:$48 sps:$4 sm:$0xff]   ;;  %v5629_v9 = vld [vmem:[%s6458_s25 + $0x664] ss:$48 sps:$4 sm:$0xff]  }
  0x28   : > { %3768 = vmatprep.subr.bf16.mxu0 %v5559_v26  ;;  %3891 = vmatprep.subr.bf16.mxu1 %v5561_v27  ;;  %v5632_v10 = vld [vmem:[%s6458_s25 + $0x66c] ss:$48 sps:$4 sm:$0xff]   ;;  %v5627_v11 = vld [vmem:[%s6458_s25 + $0x660] ss:$48 sps:$4 sm:$0xff]   ;;  %v5630_v12 = vld [vmem:[%s6458_s25 + $0x668] ss:$48 sps:$4 sm:$0xff]  }
  0x29   : > { %v5635_v0 = vld [vmem:[%s6458_s25 + $0x6c4] ss:$48 sps:$4 sm:$0xff]   ;;  %v5638_v13 = vld [vmem:[%s6458_s25 + $0x6cc] ss:$48 sps:$4 sm:$0xff]   ;;  %v5633_v14 = vld [vmem:[%s6458_s25 + $0x6c0] ss:$48 sps:$4 sm:$0xff]  }
  0x2a   : > { %v5636_v15 = vld [vmem:[%s6458_s25 + $0x6c8] ss:$48 sps:$4 sm:$0xff]   ;;  %v5641_v16 = vld [vmem:[%s6458_s25 + $0x724] ss:$48 sps:$4 sm:$0xff]   ;;  %v5644_v17 = vld [vmem:[%s6458_s25 + $0x72c] ss:$48 sps:$4 sm:$0xff]  }
  0x2b   : > { %3769 = vmatpush1.bf16.msra.mxu0 %v5563_v28  ;;  %3892 = vmatpush1.bf16.msra.mxu1 %v5564_v29  ;;  %v5639_v18 = vld [vmem:[%s6458_s25 + $0x720] ss:$48 sps:$4 sm:$0xff]   ;;  %v5642_v19 = vld [vmem:[%s6458_s25 + $0x728] ss:$48 sps:$4 sm:$0xff]   ;;  %v5647_v20 = vld [vmem:[%s6458_s25 + $0x784] ss:$48 sps:$4 sm:$0xff]  }
  0x2c   : > { %3770 = vmatprep.subr.bf16.mxu0 %v5565_v30  ;;  %3893 = vmatprep.subr.bf16.mxu1 %v5567_v31  ;;  %v5650_v21 = vld [vmem:[%s6458_s25 + $0x78c] ss:$48 sps:$4 sm:$0xff]   ;;  %v5645_v22 = vld [vmem:[%s6458_s25 + $0x780] ss:$48 sps:$4 sm:$0xff]   ;;  %v5648_v23 = vld [vmem:[%s6458_s25 + $0x788] ss:$48 sps:$4 sm:$0xff]  }
  0x2d   : > { %v5653_v24 = vld [vmem:[%s6458_s25 + $0x7e4] ss:$48 sps:$4 sm:$0xff]   ;;  %v5656_v25 = vld [vmem:[%s6458_s25 + $0x7ec] ss:$48 sps:$4 sm:$0xff]   ;;  %v5651_v26 = vld [vmem:[%s6458_s25 + $0x7e0] ss:$48 sps:$4 sm:$0xff]  }
  0x2e   : > { %v5654_v27 = vld [vmem:[%s6458_s25 + $0x7e8] ss:$48 sps:$4 sm:$0xff]   ;;  %v5659_v28 = vld [vmem:[%s6458_s25 + $0x844] ss:$48 sps:$4 sm:$0xff]   ;;  %v5662_v29 = vld [vmem:[%s6458_s25 + $0x84c] ss:$48 sps:$4 sm:$0xff]  }
  0x2f   : > { %3771 = vmatpush1.bf16.msra.mxu0 %v5569_v32  ;;  %3894 = vmatpush1.bf16.msra.mxu1 %v5570_v33  ;;  %v6559_v30 = vld [vmem:[%s7134_s0 + $0x8] sm:$0xff]  ;;  %v5657_v32 = vld [vmem:[%s6458_s25 + $0x840] ss:$48 sps:$4 sm:$0xff]   ;;  %s5511_s16 = smul.u32 48, %s7141_s19 }
  0x30   : > { %3772 = vmatprep.subr.bf16.mxu0 %v5571_v34  ;;  %3895 = vmatprep.subr.bf16.mxu1 %v5573_v35  ;;  %v6563_v31 = vcombine.high %v6559_v30, %v6559_v30  ;;  %v5660_v33 = vld [vmem:[%s6458_s25 + $0x848] ss:$48 sps:$4 sm:$0xff]   ;;  %v5665_v34 = vld [vmem:[%s6458_s25 + $0x8a4] ss:$48 sps:$4 sm:$0xff]   ;;  %v5668_v35 = vld [vmem:[%s6458_s25 + $0x8ac] ss:$48 sps:$4 sm:$0xff]  }
  0x31   : > { %s275_s21 = scalar_lea.vmem %s7139_s5, %s5511_s16 }
  0x33   : > { %3773 = vmatpush1.bf16.msra.mxu0 %v5575_v36  ;;  %3896 = vmatpush1.bf16.msra.mxu1 %v5576_v37  ;;  %v5663_v36 = vld [vmem:[%s6458_s25 + $0x8a0] ss:$48 sps:$4 sm:$0xff]   ;;  %v5666_v37 = vld [vmem:[%s6458_s25 + $0x8a8] ss:$48 sps:$4 sm:$0xff]  }
  0x34   : > { %3774 = vmatprep.subr.bf16.mxu0 %v5577_v38  ;;  %3897 = vmatprep.subr.bf16.mxu1 %v5579_v39  ;;  %v5671_v38 = vld [vmem:[%s6458_s25 + $0x904] ss:$48 sps:$4 sm:$0xff]   ;;  %v5674_v39 = vld [vmem:[%s6458_s25 + $0x90c] ss:$48 sps:$4 sm:$0xff]  }
  0x37   : > { %3775 = vmatpush1.bf16.msra.mxu0 %v5581_v40  ;;  %3898 = vmatpush1.bf16.msra.mxu1 %v5582_v41  ;;  %v5669_v40 = vld [vmem:[%s6458_s25 + $0x900] ss:$48 sps:$4 sm:$0xff]   ;;  %v5672_v41 = vld [vmem:[%s6458_s25 + $0x908] ss:$48 sps:$4 sm:$0xff]  }
  0x38   : > { %3776 = vmatprep.subr.bf16.mxu0 %v5583_v42  ;;  %3899 = vmatprep.subr.bf16.mxu1 %v5585_v43  ;;  %v5677_v42 = vld [vmem:[%s6458_s25 + $0x964] ss:$48 sps:$4 sm:$0xff]   ;;  %v5680_v43 = vld [vmem:[%s6458_s25 + $0x96c] ss:$48 sps:$4 sm:$0xff]  }
  0x3b   : > { %3777 = vmatpush1.bf16.msra.mxu0 %v5587_v44  ;;  %3900 = vmatpush1.bf16.msra.mxu1 %v5588_v45  ;;  %v5675_v44 = vld [vmem:[%s6458_s25 + $0x960] ss:$48 sps:$4 sm:$0xff]   ;;  %v5678_v45 = vld [vmem:[%s6458_s25 + $0x968] ss:$48 sps:$4 sm:$0xff]  }
  0x3c   : > { %3778 = vmatprep.subr.bf16.mxu0 %v5589_v46  ;;  %3901 = vmatprep.subr.bf16.mxu1 %v5591_v47  ;;  %v5683_v46 = vld [vmem:[%s6458_s25 + $0x9c4] ss:$48 sps:$4 sm:$0xff]   ;;  %v5686_v47 = vld [vmem:[%s6458_s25 + $0x9cc] ss:$48 sps:$4 sm:$0xff]  }
  0x3f   : > { %3779 = vmatpush1.bf16.msra.mxu0 %v5593_v48  ;;  %3902 = vmatpush1.bf16.msra.mxu1 %v5594_v49  ;;  %v5681_v48 = vld [vmem:[%s6458_s25 + $0x9c0] ss:$48 sps:$4 sm:$0xff]   ;;  %v5684_v49 = vld [vmem:[%s6458_s25 + $0x9c8] ss:$48 sps:$4 sm:$0xff]  }
  0x40   : > { %3780 = vmatprep.subr.bf16.mxu0 %v5595_v50  ;;  %3903 = vmatprep.subr.bf16.mxu1 %v5597_v51  ;;  %v5689_v50 = vld [vmem:[%s6458_s25 + $0xa24] ss:$48 sps:$4 sm:$0xff]   ;;  %v5692_v51 = vld [vmem:[%s6458_s25 + $0xa2c] ss:$48 sps:$4 sm:$0xff]  }
  0x43   : > { %3781 = vmatpush1.bf16.msra.mxu0 %v5599_v52  ;;  %3904 = vmatpush1.bf16.msra.mxu1 %v5600_v53  ;;  %v5687_v52 = vld [vmem:[%s6458_s25 + $0xa20] ss:$48 sps:$4 sm:$0xff]   ;;  %v5690_v53 = vld [vmem:[%s6458_s25 + $0xa28] ss:$48 sps:$4 sm:$0xff]  }
  0x44   : > { %3782 = vmatprep.subr.bf16.mxu0 %v5601_v54  ;;  %3905 = vmatprep.subr.bf16.mxu1 %v5603_v55  ;;  %v5695_v54 = vld [vmem:[%s6458_s25 + $0xa84] ss:$48 sps:$4 sm:$0xff]   ;;  %v5698_v55 = vld [vmem:[%s6458_s25 + $0xa8c] ss:$48 sps:$4 sm:$0xff]  }
  0x47   : > { %3783 = vmatpush1.bf16.msra.mxu0 %v5605_v56  ;;  %3906 = vmatpush1.bf16.msra.mxu1 %v5606_v57  ;;  %v5693_v56 = vld [vmem:[%s6458_s25 + $0xa80] ss:$48 sps:$4 sm:$0xff]   ;;  %v5696_v57 = vld [vmem:[%s6458_s25 + $0xa88] ss:$48 sps:$4 sm:$0xff]  }
  0x48   : > { %3784 = vmatprep.subr.bf16.mxu0 %v5607_v58  ;;  %3907 = vmatprep.subr.bf16.mxu1 %v5609_v59  ;;  %v5701_v58 = vld [vmem:[%s6458_s25 + $0xae4] ss:$48 sps:$4 sm:$0xff]   ;;  %v5704_v59 = vld [vmem:[%s6458_s25 + $0xaec] ss:$48 sps:$4 sm:$0xff]  }
  0x4b   : > { %3785 = vmatpush1.bf16.msra.mxu0 %v5611_v60  ;;  %3908 = vmatpush1.bf16.msra.mxu1 %v5612_v61  ;;  %v5699_v60 = vld [vmem:[%s6458_s25 + $0xae0] ss:$48 sps:$4 sm:$0xff]   ;;  %v5702_v61 = vld [vmem:[%s6458_s25 + $0xae8] ss:$48 sps:$4 sm:$0xff]  }
  0x4c   : > { %3786 = vmatprep.subr.bf16.mxu0 %v5613_v62  ;;  %3909 = vmatprep.subr.bf16.mxu1 %v5615_v63  ;;  %v5707_v62 = vld [vmem:[%s6458_s25 + $0xb44] ss:$48 sps:$4 sm:$0xff]   ;;  %v5710_v63 = vld [vmem:[%s6458_s25 + $0xb4c] ss:$48 sps:$4 sm:$0xff]  }
  0x4f   : > { %3787 = vmatpush1.bf16.msra.mxu0 %v5617_v2  ;;  %3910 = vmatpush1.bf16.msra.mxu1 %v5618_v3  ;;  %v5705_v2 = vld [vmem:[%s6458_s25 + $0xb40] ss:$48 sps:$4 sm:$0xff]   ;;  %v5708_v3 = vld [vmem:[%s6458_s25 + $0xb48] ss:$48 sps:$4 sm:$0xff]  }
  0x50   : > { %3797 = vmatprep.subr.bf16.mxu0 %v5622_v4  ;;  %3920 = vmatprep.subr.bf16.mxu1 %v5625_v5  ;;  %v5713_v4 = vld [vmem:[%s6458_s25 + $0xba4] ss:$48 sps:$4 sm:$0xff]   ;;  %v5716_v5 = vld [vmem:[%s6458_s25 + $0xbac] ss:$48 sps:$4 sm:$0xff]  }
  0x52   : > { %3789 = vmatmul.mubr.bf16.vlgmr.msra.gmra.mrb[0].mxu0 %v6530_v8  ;;  %3912 = vmatmul.mubr.bf16.vlgmr.msra.gmra.mrb[0].mxu1 %v6530_v8 }
  0x53   : > { %3798 = vmatpush1.bf16.msra.mxu0 %v5620_v6  ;;  %3921 = vmatpush1.bf16.msra.mxu1 %v5623_v7  ;;  %v5711_v6 = vld [vmem:[%s6458_s25 + $0xba0] ss:$48 sps:$4 sm:$0xff]   ;;  %v5714_v7 = vld [vmem:[%s6458_s25 + $0xba8] ss:$48 sps:$4 sm:$0xff]  }
  0x54   : > { %3799 = vmatprep.subr.bf16.mxu0 %v5629_v9  ;;  %3922 = vmatprep.subr.bf16.mxu1 %v5632_v10  ;;  %v5720_v9 = vld [vmem:[%s6458_s25 + $0xc04] ss:$48 sps:$4 sm:$0xff]   ;;  %v5723_v10 = vld [vmem:[%s6458_s25 + $0xc0c] ss:$48 sps:$4 sm:$0xff]  }
  0x55   : > { %3829 = vmatprep.mubr.bf16.mxu0 %v6563_v31  ;;  %3952 = vmatprep.mubr.bf16.mxu1 %v6563_v31 }
  0x57   : > { %3800 = vmatpush1.bf16.msra.mxu0 %v5627_v11  ;;  %3923 = vmatpush1.bf16.msra.mxu1 %v5630_v12  ;;  %v5718_v11 = vld [vmem:[%s6458_s25 + $0xc00] ss:$48 sps:$4 sm:$0xff]   ;;  %v6610_v12 = vcombine.low %v6559_v30, %v6559_v30  ;;  %v5746_v30 = vld [vmem:[%s6458_s25 + $0xd88] ss:$48 sps:$4 sm:$0xff]  }
  0x58   : > { %3801 = vmatprep.subr.bf16.mxu0 %v5635_v0  ;;  %3924 = vmatprep.subr.bf16.mxu1 %v5638_v13  ;;  %v5721_v0 = vld [vmem:[%s6458_s25 + $0xc08] ss:$48 sps:$4 sm:$0xff]   ;;  %v6616_v13 = vld [vmem:[%s7134_s0 + $0x10] sm:$0xff] }
  0x5b   : > { %3802 = vmatpush1.bf16.msra.mxu0 %v5633_v14  ;;  %3925 = vmatpush1.bf16.msra.mxu1 %v5636_v15  ;;  %v5727_v14 = vld [vmem:[%s6458_s25 + $0xc64] ss:$48 sps:$4 sm:$0xff]   ;;  %v5730_v15 = vld [vmem:[%s6458_s25 + $0xc6c] ss:$48 sps:$4 sm:$0xff]  }
  0x5c   : > { %3803 = vmatprep.subr.bf16.mxu0 %v5641_v16  ;;  %3926 = vmatprep.subr.bf16.mxu1 %v5644_v17  ;;  %v6622_v16 = vcombine.high %v6616_v13, %v6616_v13  ;;  %v5725_v17 = vld [vmem:[%s6458_s25 + $0xc60] ss:$48 sps:$4 sm:$0xff]  }
  0x5f   : > { %3804 = vmatpush1.bf16.msra.mxu0 %v5639_v18  ;;  %3927 = vmatpush1.bf16.msra.mxu1 %v5642_v19  ;;  %v5728_v18 = vld [vmem:[%s6458_s25 + $0xc68] ss:$48 sps:$4 sm:$0xff]   ;;  %v5733_v19 = vld [vmem:[%s6458_s25 + $0xcc4] ss:$48 sps:$4 sm:$0xff]  }
  0x60   : > { %3805 = vmatprep.subr.bf16.mxu0 %v5647_v20  ;;  %3928 = vmatprep.subr.bf16.mxu1 %v5650_v21  ;;  %v5736_v20 = vld [vmem:[%s6458_s25 + $0xccc] ss:$48 sps:$4 sm:$0xff]   ;;  %v5731_v21 = vld [vmem:[%s6458_s25 + $0xcc0] ss:$48 sps:$4 sm:$0xff]  }
  0x63   : > { %3806 = vmatpush1.bf16.msra.mxu0 %v5645_v22  ;;  %3929 = vmatpush1.bf16.msra.mxu1 %v5648_v23  ;;  %v5734_v22 = vld [vmem:[%s6458_s25 + $0xcc8] ss:$48 sps:$4 sm:$0xff]   ;;  %v5739_v23 = vld [vmem:[%s6458_s25 + $0xd24] ss:$48 sps:$4 sm:$0xff]  }
  0x64   : > { %3807 = vmatprep.subr.bf16.mxu0 %v5653_v24  ;;  %3930 = vmatprep.subr.bf16.mxu1 %v5656_v25  ;;  %v5742_v24 = vld [vmem:[%s6458_s25 + $0xd2c] ss:$48 sps:$4 sm:$0xff]   ;;  %v5737_v25 = vld [vmem:[%s6458_s25 + $0xd20] ss:$48 sps:$4 sm:$0xff]  }
  0x67   : > { %3808 = vmatpush1.bf16.msra.mxu0 %v5651_v26  ;;  %3931 = vmatpush1.bf16.msra.mxu1 %v5654_v27  ;;  %v5740_v26 = vld [vmem:[%s6458_s25 + $0xd28] ss:$48 sps:$4 sm:$0xff]   ;;  %v5745_v27 = vld [vmem:[%s6458_s25 + $0xd84] ss:$48 sps:$4 sm:$0xff]  }
  0x68   : > { %3809 = vmatprep.subr.bf16.mxu0 %v5659_v28  ;;  %3932 = vmatprep.subr.bf16.mxu1 %v5662_v29  ;;  %v5748_v28 = vld [vmem:[%s6458_s25 + $0xd8c] ss:$48 sps:$4 sm:$0xff]   ;;  %v5743_v29 = vld [vmem:[%s6458_s25 + $0xd80] ss:$48 sps:$4 sm:$0xff]  }
  0x6b   : > { %3810 = vmatpush1.bf16.msra.mxu0 %v5657_v32  ;;  %3933 = vmatpush1.bf16.msra.mxu1 %v5660_v33  ;;  %v5751_v32 = vld [vmem:[%s6458_s25 + $0xde4] ss:$48 sps:$4 sm:$0xff]   ;;  %v5754_v33 = vld [vmem:[%s6458_s25 + $0xdec] ss:$48 sps:$4 sm:$0xff]  }
  0x6c   : > { %3811 = vmatprep.subr.bf16.mxu0 %v5665_v34  ;;  %3934 = vmatprep.subr.bf16.mxu1 %v5668_v35  ;;  %v5749_v34 = vld [vmem:[%s6458_s25 + $0xde0] ss:$48 sps:$4 sm:$0xff]   ;;  %v5752_v35 = vld [vmem:[%s6458_s25 + $0xde8] ss:$48 sps:$4 sm:$0xff]  }
  0x6f   : > { %3812 = vmatpush1.bf16.msra.mxu0 %v5663_v36  ;;  %3935 = vmatpush1.bf16.msra.mxu1 %v5666_v37  ;;  %v5757_v36 = vld [vmem:[%s6458_s25 + $0xe44] ss:$48 sps:$4 sm:$0xff]   ;;  %v5760_v37 = vld [vmem:[%s6458_s25 + $0xe4c] ss:$48 sps:$4 sm:$0xff]  }
  0x70   : > { %3813 = vmatprep.subr.bf16.mxu0 %v5671_v38  ;;  %3936 = vmatprep.subr.bf16.mxu1 %v5674_v39  ;;  %v5755_v38 = vld [vmem:[%s6458_s25 + $0xe40] ss:$48 sps:$4 sm:$0xff]   ;;  %v5758_v39 = vld [vmem:[%s6458_s25 + $0xe48] ss:$48 sps:$4 sm:$0xff]  }
  0x73   : > { %3814 = vmatpush1.bf16.msra.mxu0 %v5669_v40  ;;  %3937 = vmatpush1.bf16.msra.mxu1 %v5672_v41  ;;  %v5763_v40 = vld [vmem:[%s6458_s25 + $0xea4] ss:$48 sps:$4 sm:$0xff]   ;;  %v5766_v41 = vld [vmem:[%s6458_s25 + $0xeac] ss:$48 sps:$4 sm:$0xff]  }
  0x74   : > { %3815 = vmatprep.subr.bf16.mxu0 %v5677_v42  ;;  %3938 = vmatprep.subr.bf16.mxu1 %v5680_v43  ;;  %v5761_v42 = vld [vmem:[%s6458_s25 + $0xea0] ss:$48 sps:$4 sm:$0xff]   ;;  %v5764_v43 = vld [vmem:[%s6458_s25 + $0xea8] ss:$48 sps:$4 sm:$0xff]  }
  0x77   : > { %3816 = vmatpush1.bf16.msra.mxu0 %v5675_v44  ;;  %3939 = vmatpush1.bf16.msra.mxu1 %v5678_v45  ;;  %v5769_v44 = vld [vmem:[%s6458_s25 + $0xf04] ss:$48 sps:$4 sm:$0xff]   ;;  %v5772_v45 = vld [vmem:[%s6458_s25 + $0xf0c] ss:$48 sps:$4 sm:$0xff]  }
  0x78   : > { %3817 = vmatprep.subr.bf16.mxu0 %v5683_v46  ;;  %3940 = vmatprep.subr.bf16.mxu1 %v5686_v47  ;;  %v5767_v46 = vld [vmem:[%s6458_s25 + $0xf00] ss:$48 sps:$4 sm:$0xff]   ;;  %v5770_v47 = vld [vmem:[%s6458_s25 + $0xf08] ss:$48 sps:$4 sm:$0xff]  }
  0x7b   : > { %3818 = vmatpush1.bf16.msra.mxu0 %v5681_v48  ;;  %3941 = vmatpush1.bf16.msra.mxu1 %v5684_v49  ;;  %v5775_v48 = vld [vmem:[%s6458_s25 + $0xf64] ss:$48 sps:$4 sm:$0xff]   ;;  %v5778_v49 = vld [vmem:[%s6458_s25 + $0xf6c] ss:$48 sps:$4 sm:$0xff]  }
  0x7c   : > { %3819 = vmatprep.subr.bf16.mxu0 %v5689_v50  ;;  %3942 = vmatprep.subr.bf16.mxu1 %v5692_v51  ;;  %v5773_v50 = vld [vmem:[%s6458_s25 + $0xf60] ss:$48 sps:$4 sm:$0xff]   ;;  %v5776_v51 = vld [vmem:[%s6458_s25 + $0xf68] ss:$48 sps:$4 sm:$0xff]  }
  0x7f   : > { %3820 = vmatpush1.bf16.msra.mxu0 %v5687_v52  ;;  %3943 = vmatpush1.bf16.msra.mxu1 %v5690_v53  ;;  %v5781_v52 = vld [vmem:[%s6458_s25 + $0xfc4] ss:$48 sps:$4 sm:$0xff]   ;;  %v5784_v53 = vld [vmem:[%s6458_s25 + $0xfcc] ss:$48 sps:$4 sm:$0xff]  }
  0x80   : > { %3821 = vmatprep.subr.bf16.mxu0 %v5695_v54  ;;  %3944 = vmatprep.subr.bf16.mxu1 %v5698_v55  ;;  %v5779_v54 = vld [vmem:[%s6458_s25 + $0xfc0] ss:$48 sps:$4 sm:$0xff]   ;;  %v5782_v55 = vld [vmem:[%s6458_s25 + $0xfc8] ss:$48 sps:$4 sm:$0xff]  }
  0x83   : > { %3822 = vmatpush1.bf16.msra.mxu0 %v5693_v56  ;;  %3945 = vmatpush1.bf16.msra.mxu1 %v5696_v57  ;;  %v5787_v56 = vld [vmem:[%s6458_s25 + $0x1024] ss:$48 sps:$4 sm:$0xff]   ;;  %v5790_v57 = vld [vmem:[%s6458_s25 + $0x102c] ss:$48 sps:$4 sm:$0xff]  }
  0x84   : > { %3823 = vmatprep.subr.bf16.mxu0 %v5701_v58  ;;  %3946 = vmatprep.subr.bf16.mxu1 %v5704_v59  ;;  %v5785_v58 = vld [vmem:[%s6458_s25 + $0x1020] ss:$48 sps:$4 sm:$0xff]   ;;  %v5788_v59 = vld [vmem:[%s6458_s25 + $0x1028] ss:$48 sps:$4 sm:$0xff]  }
  0x87   : > { %3824 = vmatpush1.bf16.msra.mxu0 %v5699_v60  ;;  %3947 = vmatpush1.bf16.msra.mxu1 %v5702_v61  ;;  %v5793_v60 = vld [vmem:[%s6458_s25 + $0x1084] ss:$48 sps:$4 sm:$0xff]   ;;  %v5796_v61 = vld [vmem:[%s6458_s25 + $0x108c] ss:$48 sps:$4 sm:$0xff]  }
  0x88   : > { %3825 = vmatprep.subr.bf16.mxu0 %v5707_v62  ;;  %3948 = vmatprep.subr.bf16.mxu1 %v5710_v63  ;;  %v5791_v62 = vld [vmem:[%s6458_s25 + $0x1080] ss:$48 sps:$4 sm:$0xff]   ;;  %v5794_v63 = vld [vmem:[%s6458_s25 + $0x1088] ss:$48 sps:$4 sm:$0xff]  }
  0x8b   : > { %3826 = vmatpush1.bf16.msra.mxu0 %v5705_v2  ;;  %3949 = vmatpush1.bf16.msra.mxu1 %v5708_v3  ;;  %v5799_v2 = vld [vmem:[%s6458_s25 + $0x10e4] ss:$48 sps:$4 sm:$0xff]   ;;  %v5802_v3 = vld [vmem:[%s6458_s25 + $0x10ec] ss:$48 sps:$4 sm:$0xff]  }
  0x8c   : > { %3827 = vmatprep.subr.bf16.mxu0 %v5713_v4  ;;  %3950 = vmatprep.subr.bf16.mxu1 %v5716_v5  ;;  %v5797_v4 = vld [vmem:[%s6458_s25 + $0x10e0] ss:$48 sps:$4 sm:$0xff]   ;;  %v5800_v5 = vld [vmem:[%s6458_s25 + $0x10e8] ss:$48 sps:$4 sm:$0xff]  }
  0x8f   : > { %3828 = vmatpush1.bf16.msra.mxu0 %v5711_v6  ;;  %3951 = vmatpush1.bf16.msra.mxu1 %v5714_v7  ;;  %v5805_v6 = vld [vmem:[%s6458_s25 + $0x1144] ss:$48 sps:$4 sm:$0xff]   ;;  %v5808_v7 = vld [vmem:[%s6458_s25 + $0x114c] ss:$48 sps:$4 sm:$0xff]  }
  0x90   : > { %3838 = vmatprep.subr.bf16.mxu0 %v5720_v9  ;;  %3961 = vmatprep.subr.bf16.mxu1 %v5723_v10  ;;  %v5803_v9 = vld [vmem:[%s6458_s25 + $0x1140] ss:$48 sps:$4 sm:$0xff]   ;;  %v5806_v10 = vld [vmem:[%s6458_s25 + $0x1148] ss:$48 sps:$4 sm:$0xff]  }
  0x92   : > { %3830 = vmatmul.mubr.bf16.vlgmr.msra.gmra.mrb[0].mxu0 %v6610_v12  ;;  %3953 = vmatmul.mubr.bf16.vlgmr.msra.gmra.mrb[0].mxu1 %v6610_v12 }
  0x93   : > { %3839 = vmatpush1.bf16.msra.mxu0 %v5718_v11  ;;  %3962 = vmatpush1.bf16.msra.mxu1 %v5721_v0  ;;  %v5811_v11 = vld [vmem:[%s6458_s25 + $0x11a4] ss:$48 sps:$4 sm:$0xff]   ;;  %v5814_v0 = vld [vmem:[%s6458_s25 + $0x11ac] ss:$48 sps:$4 sm:$0xff]  }
  0x94   : > { %3840 = vmatprep.subr.bf16.mxu0 %v5727_v14  ;;  %3963 = vmatprep.subr.bf16.mxu1 %v5730_v15  ;;  %v5809_v14 = vld [vmem:[%s6458_s25 + $0x11a0] ss:$48 sps:$4 sm:$0xff]   ;;  %v5812_v15 = vld [vmem:[%s6458_s25 + $0x11a8] ss:$48 sps:$4 sm:$0xff]  }
  0x95   : > { %3870 = vmatprep.mubr.bf16.mxu0 %v6622_v16  ;;  %3993 = vmatprep.mubr.bf16.mxu1 %v6622_v16 }
  0x97   : > { %3841 = vmatpush1.bf16.msra.mxu0 %v5725_v17  ;;  %3964 = vmatpush1.bf16.msra.mxu1 %v5728_v18  ;;  %v5819_v17 = vld [vmem:[%s6458_s25 + $0x14] ss:$48 sps:$4 sm:$0xff]   ;;  %v5822_v18 = vld [vmem:[%s6458_s25 + $0x1c] ss:$48 sps:$4 sm:$0xff]  }
  0x98   : > { %3842 = vmatprep.subr.bf16.mxu0 %v5733_v19  ;;  %3965 = vmatprep.subr.bf16.mxu1 %v5736_v20  ;;  %v6690_v19 = vcombine.low %v6616_v13, %v6616_v13  ;;  %v5817_v20 = vld [vmem:[%s6458_s25 + $0x10] ss:$48 sps:$4 sm:$0xff]  }
  0x99   : > { %v5823_v13 = vld [vmem:[%s6458_s25 + $0x70] ss:$48 sps:$4 sm:$0xff]  }
  0x9b   : > { %3843 = vmatpush1.bf16.msra.mxu0 %v5731_v21  ;;  %3966 = vmatpush1.bf16.msra.mxu1 %v5734_v22  ;;  %v5820_v21 = vld [vmem:[%s6458_s25 + $0x18] ss:$48 sps:$4 sm:$0xff]   ;;  %v5825_v22 = vld [vmem:[%s6458_s25 + $0x74] ss:$48 sps:$4 sm:$0xff]  }
  0x9c   : > { %3844 = vmatprep.subr.bf16.mxu0 %v5739_v23  ;;  %3967 = vmatprep.subr.bf16.mxu1 %v5742_v24  ;;  %v5828_v23 = vld [vmem:[%s6458_s25 + $0x7c] ss:$48 sps:$4 sm:$0xff]   ;;  %v5826_v24 = vld [vmem:[%s6458_s25 + $0x78] ss:$48 sps:$4 sm:$0xff]  }
  0x9f   : > { %3845 = vmatpush1.bf16.msra.mxu0 %v5737_v25  ;;  %3968 = vmatpush1.bf16.msra.mxu1 %v5740_v26  ;;  %v5831_v25 = vld [vmem:[%s6458_s25 + $0xd4] ss:$48 sps:$4 sm:$0xff]   ;;  %v5834_v26 = vld [vmem:[%s6458_s25 + $0xdc] ss:$48 sps:$4 sm:$0xff]  }
  0xa0   : > { %3846 = vmatprep.subr.bf16.mxu0 %v5745_v27  ;;  %3969 = vmatprep.subr.bf16.mxu1 %v5748_v28  ;;  %v5829_v27 = vld [vmem:[%s6458_s25 + $0xd0] ss:$48 sps:$4 sm:$0xff]   ;;  %v5832_v28 = vld [vmem:[%s6458_s25 + $0xd8] ss:$48 sps:$4 sm:$0xff]  }
  0xa3   : > { %3847 = vmatpush1.bf16.msra.mxu0 %v5743_v29  ;;  %3970 = vmatpush1.bf16.msra.mxu1 %v5746_v30  ;;  %v5837_v29 = vld [vmem:[%s6458_s25 + $0x134] ss:$48 sps:$4 sm:$0xff]   ;;  %v5840_v30 = vld [vmem:[%s6458_s25 + $0x13c] ss:$48 sps:$4 sm:$0xff]  }
  0xa4   : > { %3848 = vmatprep.subr.bf16.mxu0 %v5751_v32  ;;  %3971 = vmatprep.subr.bf16.mxu1 %v5754_v33  ;;  %v5835_v32 = vld [vmem:[%s6458_s25 + $0x130] ss:$48 sps:$4 sm:$0xff]   ;;  %v5838_v33 = vld [vmem:[%s6458_s25 + $0x138] ss:$48 sps:$4 sm:$0xff]  }
  0xa7   : > { %3849 = vmatpush1.bf16.msra.mxu0 %v5749_v34  ;;  %3972 = vmatpush1.bf16.msra.mxu1 %v5752_v35  ;;  %v5843_v34 = vld [vmem:[%s6458_s25 + $0x194] ss:$48 sps:$4 sm:$0xff]   ;;  %v5846_v35 = vld [vmem:[%s6458_s25 + $0x19c] ss:$48 sps:$4 sm:$0xff]  }
  0xa8   : > { %3850 = vmatprep.subr.bf16.mxu0 %v5757_v36  ;;  %3973 = vmatprep.subr.bf16.mxu1 %v5760_v37  ;;  %v5841_v36 = vld [vmem:[%s6458_s25 + $0x190] ss:$48 sps:$4 sm:$0xff]   ;;  %v5844_v37 = vld [vmem:[%s6458_s25 + $0x198] ss:$48 sps:$4 sm:$0xff]  }
  0xab   : > { %3851 = vmatpush1.bf16.msra.mxu0 %v5755_v38  ;;  %3974 = vmatpush1.bf16.msra.mxu1 %v5758_v39  ;;  %v5849_v38 = vld [vmem:[%s6458_s25 + $0x1f4] ss:$48 sps:$4 sm:$0xff]   ;;  %v5852_v39 = vld [vmem:[%s6458_s25 + $0x1fc] ss:$48 sps:$4 sm:$0xff]  }
  0xac   : > { %3852 = vmatprep.subr.bf16.mxu0 %v5763_v40  ;;  %3975 = vmatprep.subr.bf16.mxu1 %v5766_v41  ;;  %v5847_v40 = vld [vmem:[%s6458_s25 + $0x1f0] ss:$48 sps:$4 sm:$0xff]   ;;  %v5850_v41 = vld [vmem:[%s6458_s25 + $0x1f8] ss:$48 sps:$4 sm:$0xff]  }
  0xaf   : > { %3853 = vmatpush1.bf16.msra.mxu0 %v5761_v42  ;;  %3976 = vmatpush1.bf16.msra.mxu1 %v5764_v43  ;;  %v5855_v42 = vld [vmem:[%s6458_s25 + $0x254] ss:$48 sps:$4 sm:$0xff]   ;;  %v5858_v43 = vld [vmem:[%s6458_s25 + $0x25c] ss:$48 sps:$4 sm:$0xff]  }
  0xb0   : > { %3854 = vmatprep.subr.bf16.mxu0 %v5769_v44  ;;  %3977 = vmatprep.subr.bf16.mxu1 %v5772_v45  ;;  %v5853_v44 = vld [vmem:[%s6458_s25 + $0x250] ss:$48 sps:$4 sm:$0xff]   ;;  %v5856_v45 = vld [vmem:[%s6458_s25 + $0x258] ss:$48 sps:$4 sm:$0xff]  }
  0xb3   : > { %3855 = vmatpush1.bf16.msra.mxu0 %v5767_v46  ;;  %3978 = vmatpush1.bf16.msra.mxu1 %v5770_v47  ;;  %v5861_v46 = vld [vmem:[%s6458_s25 + $0x2b4] ss:$48 sps:$4 sm:$0xff]   ;;  %v5864_v47 = vld [vmem:[%s6458_s25 + $0x2bc] ss:$48 sps:$4 sm:$0xff]  }
  0xb4   : > { %3856 = vmatprep.subr.bf16.mxu0 %v5775_v48  ;;  %3979 = vmatprep.subr.bf16.mxu1 %v5778_v49  ;;  %v5859_v48 = vld [vmem:[%s6458_s25 + $0x2b0] ss:$48 sps:$4 sm:$0xff]   ;;  %v5862_v49 = vld [vmem:[%s6458_s25 + $0x2b8] ss:$48 sps:$4 sm:$0xff]  }
  0xb7   : > { %3857 = vmatpush1.bf16.msra.mxu0 %v5773_v50  ;;  %3980 = vmatpush1.bf16.msra.mxu1 %v5776_v51  ;;  %v5867_v50 = vld [vmem:[%s6458_s25 + $0x314] ss:$48 sps:$4 sm:$0xff]   ;;  %v5870_v51 = vld [vmem:[%s6458_s25 + $0x31c] ss:$48 sps:$4 sm:$0xff]  }
  0xb8   : > { %3858 = vmatprep.subr.bf16.mxu0 %v5781_v52  ;;  %3981 = vmatprep.subr.bf16.mxu1 %v5784_v53  ;;  %v5865_v52 = vld [vmem:[%s6458_s25 + $0x310] ss:$48 sps:$4 sm:$0xff]   ;;  %v5868_v53 = vld [vmem:[%s6458_s25 + $0x318] ss:$48 sps:$4 sm:$0xff]  }
  0xbb   : > { %3859 = vmatpush1.bf16.msra.mxu0 %v5779_v54  ;;  %3982 = vmatpush1.bf16.msra.mxu1 %v5782_v55  ;;  %v5873_v54 = vld [vmem:[%s6458_s25 + $0x374] ss:$48 sps:$4 sm:$0xff]   ;;  %v5876_v55 = vld [vmem:[%s6458_s25 + $0x37c] ss:$48 sps:$4 sm:$0xff]  }
  0xbc   : > { %3860 = vmatprep.subr.bf16.mxu0 %v5787_v56  ;;  %3983 = vmatprep.subr.bf16.mxu1 %v5790_v57  ;;  %v5871_v56 = vld [vmem:[%s6458_s25 + $0x370] ss:$48 sps:$4 sm:$0xff]   ;;  %v5874_v57 = vld [vmem:[%s6458_s25 + $0x378] ss:$48 sps:$4 sm:$0xff]  }
  0xbf   : > { %3861 = vmatpush1.bf16.msra.mxu0 %v5785_v58  ;;  %3984 = vmatpush1.bf16.msra.mxu1 %v5788_v59  ;;  %v5879_v58 = vld [vmem:[%s6458_s25 + $0x3d4] ss:$48 sps:$4 sm:$0xff]   ;;  %v5882_v59 = vld [vmem:[%s6458_s25 + $0x3dc] ss:$48 sps:$4 sm:$0xff]  }
  0xc0   : > { %3862 = vmatprep.subr.bf16.mxu0 %v5793_v60  ;;  %3985 = vmatprep.subr.bf16.mxu1 %v5796_v61  ;;  %v5877_v60 = vld [vmem:[%s6458_s25 + $0x3d0] ss:$48 sps:$4 sm:$0xff]   ;;  %v5880_v61 = vld [vmem:[%s6458_s25 + $0x3d8] ss:$48 sps:$4 sm:$0xff]  }
  0xc3   : > { %3863 = vmatpush1.bf16.msra.mxu0 %v5791_v62  ;;  %3986 = vmatpush1.bf16.msra.mxu1 %v5794_v63  ;;  %v5885_v62 = vld [vmem:[%s6458_s25 + $0x434] ss:$48 sps:$4 sm:$0xff]   ;;  %v5888_v63 = vld [vmem:[%s6458_s25 + $0x43c] ss:$48 sps:$4 sm:$0xff]  }
  0xc4   : > { %3864 = vmatprep.subr.bf16.mxu0 %v5799_v2  ;;  %3987 = vmatprep.subr.bf16.mxu1 %v5802_v3  ;;  %v5883_v2 = vld [vmem:[%s6458_s25 + $0x430] ss:$48 sps:$4 sm:$0xff]   ;;  %v5886_v3 = vld [vmem:[%s6458_s25 + $0x438] ss:$48 sps:$4 sm:$0xff]  }
  0xc7   : > { %3865 = vmatpush1.bf16.msra.mxu0 %v5797_v4  ;;  %3988 = vmatpush1.bf16.msra.mxu1 %v5800_v5  ;;  %v5891_v4 = vld [vmem:[%s6458_s25 + $0x494] ss:$48 sps:$4 sm:$0xff]   ;;  %v5894_v5 = vld [vmem:[%s6458_s25 + $0x49c] ss:$48 sps:$4 sm:$0xff]  }
  0xc8   : > { %3866 = vmatprep.subr.bf16.mxu0 %v5805_v6  ;;  %3989 = vmatprep.subr.bf16.mxu1 %v5808_v7  ;;  %v5889_v6 = vld [vmem:[%s6458_s25 + $0x490] ss:$48 sps:$4 sm:$0xff]   ;;  %v5892_v7 = vld [vmem:[%s6458_s25 + $0x498] ss:$48 sps:$4 sm:$0xff]  }
  0xcb   : > { %3867 = vmatpush1.bf16.msra.mxu0 %v5803_v9  ;;  %3990 = vmatpush1.bf16.msra.mxu1 %v5806_v10  ;;  %v5897_v9 = vld [vmem:[%s6458_s25 + $0x4f4] ss:$48 sps:$4 sm:$0xff]   ;;  %v5900_v10 = vld [vmem:[%s6458_s25 + $0x4fc] ss:$48 sps:$4 sm:$0xff]  }
  0xcc   : > { %3868 = vmatprep.subr.bf16.mxu0 %v5811_v11  ;;  %3991 = vmatprep.subr.bf16.mxu1 %v5814_v0  ;;  %v5895_v11 = vld [vmem:[%s6458_s25 + $0x4f0] ss:$48 sps:$4 sm:$0xff]   ;;  %v5898_v0 = vld [vmem:[%s6458_s25 + $0x4f8] ss:$48 sps:$4 sm:$0xff]  }
  0xcf   : > { %3869 = vmatpush1.bf16.msra.mxu0 %v5809_v14  ;;  %3992 = vmatpush1.bf16.msra.mxu1 %v5812_v15  ;;  %v5903_v14 = vld [vmem:[%s6458_s25 + $0x554] ss:$48 sps:$4 sm:$0xff]   ;;  %v5906_v15 = vld [vmem:[%s6458_s25 + $0x55c] ss:$48 sps:$4 sm:$0xff]  }
  0xd0   : > { %4002 = vmatprep.subr.bf16.mxu0 %v5819_v17  ;;  %4125 = vmatprep.subr.bf16.mxu1 %v5822_v18  ;;  %v5901_v17 = vld [vmem:[%s6458_s25 + $0x550] ss:$48 sps:$4 sm:$0xff]   ;;  %v5904_v18 = vld [vmem:[%s6458_s25 + $0x558] ss:$48 sps:$4 sm:$0xff]  }
  0xd2   : > { %3871 = vmatmul.mubr.bf16.vlgmr.msra.gmra.mrb[0].mxu0 %v6690_v19  ;;  %3994 = vmatmul.mubr.bf16.vlgmr.msra.gmra.mrb[0].mxu1 %v6690_v19 }
  0xd3   : > { %4003 = vmatpush1.bf16.msra.mxu0 %v5817_v20  ;;  %4126 = vmatpush1.bf16.msra.mxu1 %v5820_v21  ;;  %v5909_v20 = vld [vmem:[%s6458_s25 + $0x5b4] ss:$48 sps:$4 sm:$0xff]   ;;  %v5912_v21 = vld [vmem:[%s6458_s25 + $0x5bc] ss:$48 sps:$4 sm:$0xff]  }
  0xd4   : > { %4004 = vmatprep.subr.bf16.mxu0 %v5825_v22  ;;  %4127 = vmatprep.subr.bf16.mxu1 %v5828_v23  ;;  %v5907_v22 = vld [vmem:[%s6458_s25 + $0x5b0] ss:$48 sps:$4 sm:$0xff]   ;;  %v5910_v23 = vld [vmem:[%s6458_s25 + $0x5b8] ss:$48 sps:$4 sm:$0xff]  }
  0xd5   : > { %4034 = vmatprep.mubr.bf16.mxu0 %v6448_v1  ;;  %4157 = vmatprep.mubr.bf16.mxu1 %v6448_v1 }
  0xd7   : > { %4005 = vmatpush1.bf16.msra.mxu0 %v5823_v13  ;;  %4128 = vmatpush1.bf16.msra.mxu1 %v5826_v24  ;;  %v5915_v13 = vld [vmem:[%s6458_s25 + $0x614] ss:$48 sps:$4 sm:$0xff]   ;;  %v5918_v24 = vld [vmem:[%s6458_s25 + $0x61c] ss:$48 sps:$4 sm:$0xff]  }
  0xd8   : > { %4006 = vmatprep.subr.bf16.mxu0 %v5831_v25  ;;  %4129 = vmatprep.subr.bf16.mxu1 %v5834_v26  ;;  %v5913_v25 = vld [vmem:[%s6458_s25 + $0x610] ss:$48 sps:$4 sm:$0xff]   ;;  %v5916_v26 = vld [vmem:[%s6458_s25 + $0x618] ss:$48 sps:$4 sm:$0xff]  }
  0xdb   : > { %4007 = vmatpush1.bf16.msra.mxu0 %v5829_v27  ;;  %4130 = vmatpush1.bf16.msra.mxu1 %v5832_v28  ;;  %v5921_v27 = vld [vmem:[%s6458_s25 + $0x674] ss:$48 sps:$4 sm:$0xff]   ;;  %v5924_v28 = vld [vmem:[%s6458_s25 + $0x67c] ss:$48 sps:$4 sm:$0xff]  }
  0xdc   : > { %4008 = vmatprep.subr.bf16.mxu0 %v5837_v29  ;;  %4131 = vmatprep.subr.bf16.mxu1 %v5840_v30  ;;  %v5919_v29 = vld [vmem:[%s6458_s25 + $0x670] ss:$48 sps:$4 sm:$0xff]   ;;  %v5922_v30 = vld [vmem:[%s6458_s25 + $0x678] ss:$48 sps:$4 sm:$0xff]  }
  0xdf   : > { %4009 = vmatpush1.bf16.msra.mxu0 %v5835_v32  ;;  %4132 = vmatpush1.bf16.msra.mxu1 %v5838_v33  ;;  %v5927_v32 = vld [vmem:[%s6458_s25 + $0x6d4] ss:$48 sps:$4 sm:$0xff]   ;;  %v5930_v33 = vld [vmem:[%s6458_s25 + $0x6dc] ss:$48 sps:$4 sm:$0xff]  }
  0xe0   : > { %4010 = vmatprep.subr.bf16.mxu0 %v5843_v34  ;;  %4133 = vmatprep.subr.bf16.mxu1 %v5846_v35  ;;  %v5925_v34 = vld [vmem:[%s6458_s25 + $0x6d0] ss:$48 sps:$4 sm:$0xff]   ;;  %v5928_v35 = vld [vmem:[%s6458_s25 + $0x6d8] ss:$48 sps:$4 sm:$0xff]  }
  0xe3   : > { %4011 = vmatpush1.bf16.msra.mxu0 %v5841_v36  ;;  %4134 = vmatpush1.bf16.msra.mxu1 %v5844_v37  ;;  %v5933_v36 = vld [vmem:[%s6458_s25 + $0x734] ss:$48 sps:$4 sm:$0xff]   ;;  %v5936_v37 = vld [vmem:[%s6458_s25 + $0x73c] ss:$48 sps:$4 sm:$0xff]  }
  0xe4   : > { %4012 = vmatprep.subr.bf16.mxu0 %v5849_v38  ;;  %4135 = vmatprep.subr.bf16.mxu1 %v5852_v39  ;;  %v5931_v38 = vld [vmem:[%s6458_s25 + $0x730] ss:$48 sps:$4 sm:$0xff]   ;;  %v5934_v39 = vld [vmem:[%s6458_s25 + $0x738] ss:$48 sps:$4 sm:$0xff]  }
  0xe7   : > { %4013 = vmatpush1.bf16.msra.mxu0 %v5847_v40  ;;  %4136 = vmatpush1.bf16.msra.mxu1 %v5850_v41  ;;  %v5939_v40 = vld [vmem:[%s6458_s25 + $0x794] ss:$48 sps:$4 sm:$0xff]   ;;  %v5942_v41 = vld [vmem:[%s6458_s25 + $0x79c] ss:$48 sps:$4 sm:$0xff]  }
  0xe8   : > { %4014 = vmatprep.subr.bf16.mxu0 %v5855_v42  ;;  %4137 = vmatprep.subr.bf16.mxu1 %v5858_v43  ;;  %v5937_v42 = vld [vmem:[%s6458_s25 + $0x790] ss:$48 sps:$4 sm:$0xff]   ;;  %v5940_v43 = vld [vmem:[%s6458_s25 + $0x798] ss:$48 sps:$4 sm:$0xff]  }
  0xeb   : > { %4015 = vmatpush1.bf16.msra.mxu0 %v5853_v44  ;;  %4138 = vmatpush1.bf16.msra.mxu1 %v5856_v45  ;;  %v5945_v44 = vld [vmem:[%s6458_s25 + $0x7f4] ss:$48 sps:$4 sm:$0xff]   ;;  %v5948_v45 = vld [vmem:[%s6458_s25 + $0x7fc] ss:$48 sps:$4 sm:$0xff]  }
  0xec   : > { %4016 = vmatprep.subr.bf16.mxu0 %v5861_v46  ;;  %4139 = vmatprep.subr.bf16.mxu1 %v5864_v47  ;;  %v5943_v46 = vld [vmem:[%s6458_s25 + $0x7f0] ss:$48 sps:$4 sm:$0xff]   ;;  %v5946_v47 = vld [vmem:[%s6458_s25 + $0x7f8] ss:$48 sps:$4 sm:$0xff]  }
  0xef   : > { %4017 = vmatpush1.bf16.msra.mxu0 %v5859_v48  ;;  %4140 = vmatpush1.bf16.msra.mxu1 %v5862_v49  ;;  %v5951_v48 = vld [vmem:[%s6458_s25 + $0x854] ss:$48 sps:$4 sm:$0xff]   ;;  %v5954_v49 = vld [vmem:[%s6458_s25 + $0x85c] ss:$48 sps:$4 sm:$0xff]  }
  0xf0   : > { %4018 = vmatprep.subr.bf16.mxu0 %v5867_v50  ;;  %4141 = vmatprep.subr.bf16.mxu1 %v5870_v51  ;;  %v5949_v50 = vld [vmem:[%s6458_s25 + $0x850] ss:$48 sps:$4 sm:$0xff]   ;;  %v5952_v51 = vld [vmem:[%s6458_s25 + $0x858] ss:$48 sps:$4 sm:$0xff]  }
  0xf3   : > { %4019 = vmatpush1.bf16.msra.mxu0 %v5865_v52  ;;  %4142 = vmatpush1.bf16.msra.mxu1 %v5868_v53  ;;  %v5957_v52 = vld [vmem:[%s6458_s25 + $0x8b4] ss:$48 sps:$4 sm:$0xff]   ;;  %v5960_v53 = vld [vmem:[%s6458_s25 + $0x8bc] ss:$48 sps:$4 sm:$0xff]  }
  0xf4   : > { %4020 = vmatprep.subr.bf16.mxu0 %v5873_v54  ;;  %4143 = vmatprep.subr.bf16.mxu1 %v5876_v55  ;;  %v5955_v54 = vld [vmem:[%s6458_s25 + $0x8b0] ss:$48 sps:$4 sm:$0xff]   ;;  %v5958_v55 = vld [vmem:[%s6458_s25 + $0x8b8] ss:$48 sps:$4 sm:$0xff]  }
  0xf7   : > { %4021 = vmatpush1.bf16.msra.mxu0 %v5871_v56  ;;  %4144 = vmatpush1.bf16.msra.mxu1 %v5874_v57  ;;  %v5963_v56 = vld [vmem:[%s6458_s25 + $0x914] ss:$48 sps:$4 sm:$0xff]   ;;  %v5966_v57 = vld [vmem:[%s6458_s25 + $0x91c] ss:$48 sps:$4 sm:$0xff]  }
  0xf8   : > { %4022 = vmatprep.subr.bf16.mxu0 %v5879_v58  ;;  %4145 = vmatprep.subr.bf16.mxu1 %v5882_v59  ;;  %v5961_v58 = vld [vmem:[%s6458_s25 + $0x910] ss:$48 sps:$4 sm:$0xff]   ;;  %v5964_v59 = vld [vmem:[%s6458_s25 + $0x918] ss:$48 sps:$4 sm:$0xff]  }
  0xfb   : > { %4023 = vmatpush1.bf16.msra.mxu0 %v5877_v60  ;;  %4146 = vmatpush1.bf16.msra.mxu1 %v5880_v61  ;;  %v5969_v60 = vld [vmem:[%s6458_s25 + $0x974] ss:$48 sps:$4 sm:$0xff]   ;;  %v5972_v61 = vld [vmem:[%s6458_s25 + $0x97c] ss:$48 sps:$4 sm:$0xff]  }
  0xfc   : > { %4024 = vmatprep.subr.bf16.mxu0 %v5885_v62  ;;  %4147 = vmatprep.subr.bf16.mxu1 %v5888_v63  ;;  %v5967_v62 = vld [vmem:[%s6458_s25 + $0x970] ss:$48 sps:$4 sm:$0xff]   ;;  %v5970_v63 = vld [vmem:[%s6458_s25 + $0x978] ss:$48 sps:$4 sm:$0xff]  }
  0xff   : > { %4025 = vmatpush1.bf16.msra.mxu0 %v5883_v2  ;;  %4148 = vmatpush1.bf16.msra.mxu1 %v5886_v3  ;;  %v5975_v2 = vld [vmem:[%s6458_s25 + $0x9d4] ss:$48 sps:$4 sm:$0xff]   ;;  %v5978_v3 = vld [vmem:[%s6458_s25 + $0x9dc] ss:$48 sps:$4 sm:$0xff]  }
 0x100   : > { %4026 = vmatprep.subr.bf16.mxu0 %v5891_v4  ;;  %4149 = vmatprep.subr.bf16.mxu1 %v5894_v5  ;;  %v5973_v4 = vld [vmem:[%s6458_s25 + $0x9d0] ss:$48 sps:$4 sm:$0xff]   ;;  %v5976_v5 = vld [vmem:[%s6458_s25 + $0x9d8] ss:$48 sps:$4 sm:$0xff]  }
 0x103   : > { %4027 = vmatpush1.bf16.msra.mxu0 %v5889_v6  ;;  %4150 = vmatpush1.bf16.msra.mxu1 %v5892_v7  ;;  %v5981_v6 = vld [vmem:[%s6458_s25 + $0xa34] ss:$48 sps:$4 sm:$0xff]   ;;  %v5984_v7 = vld [vmem:[%s6458_s25 + $0xa3c] ss:$48 sps:$4 sm:$0xff]  }
 0x104   : > { %4028 = vmatprep.subr.bf16.mxu0 %v5897_v9  ;;  %4151 = vmatprep.subr.bf16.mxu1 %v5900_v10  ;;  %v5979_v9 = vld [vmem:[%s6458_s25 + $0xa30] ss:$48 sps:$4 sm:$0xff]   ;;  %v5982_v10 = vld [vmem:[%s6458_s25 + $0xa38] ss:$48 sps:$4 sm:$0xff]  }
 0x107   : > { %4029 = vmatpush1.bf16.msra.mxu0 %v5895_v11  ;;  %4152 = vmatpush1.bf16.msra.mxu1 %v5898_v0  ;;  %v5987_v11 = vld [vmem:[%s6458_s25 + $0xa94] ss:$48 sps:$4 sm:$0xff]   ;;  %v5990_v0 = vld [vmem:[%s6458_s25 + $0xa9c] ss:$48 sps:$4 sm:$0xff]  }
 0x108   : > { %4030 = vmatprep.subr.bf16.mxu0 %v5903_v14  ;;  %4153 = vmatprep.subr.bf16.mxu1 %v5906_v15  ;;  %v5985_v14 = vld [vmem:[%s6458_s25 + $0xa90] ss:$48 sps:$4 sm:$0xff]   ;;  %v5988_v15 = vld [vmem:[%s6458_s25 + $0xa98] ss:$48 sps:$4 sm:$0xff]  }
 0x10b   : > { %4031 = vmatpush1.bf16.msra.mxu0 %v5901_v17  ;;  %4154 = vmatpush1.bf16.msra.mxu1 %v5904_v18  ;;  %v5993_v17 = vld [vmem:[%s6458_s25 + $0xaf4] ss:$48 sps:$4 sm:$0xff]   ;;  %v5996_v18 = vld [vmem:[%s6458_s25 + $0xafc] ss:$48 sps:$4 sm:$0xff]  }
 0x10c   : > { %4032 = vmatprep.subr.bf16.mxu0 %v5909_v20  ;;  %4155 = vmatprep.subr.bf16.mxu1 %v5912_v21  ;;  %v5991_v20 = vld [vmem:[%s6458_s25 + $0xaf0] ss:$48 sps:$4 sm:$0xff]   ;;  %v5994_v21 = vld [vmem:[%s6458_s25 + $0xaf8] ss:$48 sps:$4 sm:$0xff]  }
 0x10f   : > { %4033 = vmatpush1.bf16.msra.mxu0 %v5907_v22  ;;  %4156 = vmatpush1.bf16.msra.mxu1 %v5910_v23  ;;  %v5999_v22 = vld [vmem:[%s6458_s25 + $0xb54] ss:$48 sps:$4 sm:$0xff]   ;;  %v6002_v23 = vld [vmem:[%s6458_s25 + $0xb5c] ss:$48 sps:$4 sm:$0xff]  }
 0x110   : > { %4043 = vmatprep.subr.bf16.mxu0 %v5915_v13  ;;  %4166 = vmatprep.subr.bf16.mxu1 %v5918_v24  ;;  %v5997_v13 = vld [vmem:[%s6458_s25 + $0xb50] ss:$48 sps:$4 sm:$0xff]   ;;  %v6000_v24 = vld [vmem:[%s6458_s25 + $0xb58] ss:$48 sps:$4 sm:$0xff]  }
 0x112   : > { %4035 = vmatmul.mubr.bf16.vlgmr.msra.gmra.mrb[4].mxu0 %v6530_v8  ;;  %4158 = vmatmul.mubr.bf16.vlgmr.msra.gmra.mrb[4].mxu1 %v6530_v8 }
 0x113   : > { %4044 = vmatpush1.bf16.msra.mxu0 %v5913_v25  ;;  %4167 = vmatpush1.bf16.msra.mxu1 %v5916_v26  ;;  %v6005_v25 = vld [vmem:[%s6458_s25 + $0xbb4] ss:$48 sps:$4 sm:$0xff]   ;;  %v6008_v26 = vld [vmem:[%s6458_s25 + $0xbbc] ss:$48 sps:$4 sm:$0xff]  }
 0x114   : > { %4045 = vmatprep.subr.bf16.mxu0 %v5921_v27  ;;  %4168 = vmatprep.subr.bf16.mxu1 %v5924_v28  ;;  %v6003_v27 = vld [vmem:[%s6458_s25 + $0xbb0] ss:$48 sps:$4 sm:$0xff]   ;;  %v6006_v28 = vld [vmem:[%s6458_s25 + $0xbb8] ss:$48 sps:$4 sm:$0xff]  }
 0x115   : > { %4075 = vmatprep.mubr.bf16.mxu0 %v6563_v31  ;;  %4198 = vmatprep.mubr.bf16.mxu1 %v6563_v31 }
 0x117   : > { %4046 = vmatpush1.bf16.msra.mxu0 %v5919_v29  ;;  %4169 = vmatpush1.bf16.msra.mxu1 %v5922_v30  ;;  %v6011_v29 = vld [vmem:[%s6458_s25 + $0xc14] ss:$48 sps:$4 sm:$0xff]   ;;  %v6014_v30 = vld [vmem:[%s6458_s25 + $0xc1c] ss:$48 sps:$4 sm:$0xff]  }
 0x118   : > { %4047 = vmatprep.subr.bf16.mxu0 %v5927_v32  ;;  %4170 = vmatprep.subr.bf16.mxu1 %v5930_v33  ;;  %v6009_v32 = vld [vmem:[%s6458_s25 + $0xc10] ss:$48 sps:$4 sm:$0xff]   ;;  %v6012_v33 = vld [vmem:[%s6458_s25 + $0xc18] ss:$48 sps:$4 sm:$0xff]  }
 0x11b   : > { %4048 = vmatpush1.bf16.msra.mxu0 %v5925_v34  ;;  %4171 = vmatpush1.bf16.msra.mxu1 %v5928_v35  ;;  %v6017_v34 = vld [vmem:[%s6458_s25 + $0xc74] ss:$48 sps:$4 sm:$0xff]   ;;  %v6020_v35 = vld [vmem:[%s6458_s25 + $0xc7c] ss:$48 sps:$4 sm:$0xff]  }
 0x11c   : > { %4049 = vmatprep.subr.bf16.mxu0 %v5933_v36  ;;  %4172 = vmatprep.subr.bf16.mxu1 %v5936_v37  ;;  %v6015_v36 = vld [vmem:[%s6458_s25 + $0xc70] ss:$48 sps:$4 sm:$0xff]   ;;  %v6018_v37 = vld [vmem:[%s6458_s25 + $0xc78] ss:$48 sps:$4 sm:$0xff]  }
 0x11f   : > { %4050 = vmatpush1.bf16.msra.mxu0 %v5931_v38  ;;  %4173 = vmatpush1.bf16.msra.mxu1 %v5934_v39  ;;  %v6023_v38 = vld [vmem:[%s6458_s25 + $0xcd4] ss:$48 sps:$4 sm:$0xff]   ;;  %v6026_v39 = vld [vmem:[%s6458_s25 + $0xcdc] ss:$48 sps:$4 sm:$0xff]  }
 0x120   : > { %4051 = vmatprep.subr.bf16.mxu0 %v5939_v40  ;;  %4174 = vmatprep.subr.bf16.mxu1 %v5942_v41  ;;  %v6021_v40 = vld [vmem:[%s6458_s25 + $0xcd0] ss:$48 sps:$4 sm:$0xff]   ;;  %v6024_v41 = vld [vmem:[%s6458_s25 + $0xcd8] ss:$48 sps:$4 sm:$0xff]  }
 0x123   : > { %4052 = vmatpush1.bf16.msra.mxu0 %v5937_v42  ;;  %4175 = vmatpush1.bf16.msra.mxu1 %v5940_v43  ;;  %v6029_v42 = vld [vmem:[%s6458_s25 + $0xd34] ss:$48 sps:$4 sm:$0xff]   ;;  %v6032_v43 = vld [vmem:[%s6458_s25 + $0xd3c] ss:$48 sps:$4 sm:$0xff]  }
 0x124   : > { %4053 = vmatprep.subr.bf16.mxu0 %v5945_v44  ;;  %4176 = vmatprep.subr.bf16.mxu1 %v5948_v45  ;;  %v6027_v44 = vld [vmem:[%s6458_s25 + $0xd30] ss:$48 sps:$4 sm:$0xff]   ;;  %v6030_v45 = vld [vmem:[%s6458_s25 + $0xd38] ss:$48 sps:$4 sm:$0xff]  }
 0x127   : > { %4054 = vmatpush1.bf16.msra.mxu0 %v5943_v46  ;;  %4177 = vmatpush1.bf16.msra.mxu1 %v5946_v47  ;;  %v6035_v46 = vld [vmem:[%s6458_s25 + $0xd94] ss:$48 sps:$4 sm:$0xff]   ;;  %v6038_v47 = vld [vmem:[%s6458_s25 + $0xd9c] ss:$48 sps:$4 sm:$0xff]  }
 0x128   : > { %4055 = vmatprep.subr.bf16.mxu0 %v5951_v48  ;;  %4178 = vmatprep.subr.bf16.mxu1 %v5954_v49  ;;  %v6033_v48 = vld [vmem:[%s6458_s25 + $0xd90] ss:$48 sps:$4 sm:$0xff]   ;;  %v6036_v49 = vld [vmem:[%s6458_s25 + $0xd98] ss:$48 sps:$4 sm:$0xff]  }
 0x12b   : > { %4056 = vmatpush1.bf16.msra.mxu0 %v5949_v50  ;;  %4179 = vmatpush1.bf16.msra.mxu1 %v5952_v51  ;;  %v6041_v50 = vld [vmem:[%s6458_s25 + $0xdf4] ss:$48 sps:$4 sm:$0xff]   ;;  %v6044_v51 = vld [vmem:[%s6458_s25 + $0xdfc] ss:$48 sps:$4 sm:$0xff]  }
 0x12c   : > { %4057 = vmatprep.subr.bf16.mxu0 %v5957_v52  ;;  %4180 = vmatprep.subr.bf16.mxu1 %v5960_v53  ;;  %v6039_v52 = vld [vmem:[%s6458_s25 + $0xdf0] ss:$48 sps:$4 sm:$0xff]   ;;  %v6042_v53 = vld [vmem:[%s6458_s25 + $0xdf8] ss:$48 sps:$4 sm:$0xff]  }
 0x12f   : > { %4058 = vmatpush1.bf16.msra.mxu0 %v5955_v54  ;;  %4181 = vmatpush1.bf16.msra.mxu1 %v5958_v55  ;;  %v6047_v54 = vld [vmem:[%s6458_s25 + $0xe54] ss:$48 sps:$4 sm:$0xff]   ;;  %v6050_v55 = vld [vmem:[%s6458_s25 + $0xe5c] ss:$48 sps:$4 sm:$0xff]  }
 0x130   : > { %4059 = vmatprep.subr.bf16.mxu0 %v5963_v56  ;;  %4182 = vmatprep.subr.bf16.mxu1 %v5966_v57  ;;  %v6045_v56 = vld [vmem:[%s6458_s25 + $0xe50] ss:$48 sps:$4 sm:$0xff]   ;;  %v6048_v57 = vld [vmem:[%s6458_s25 + $0xe58] ss:$48 sps:$4 sm:$0xff]  }
 0x133   : > { %4060 = vmatpush1.bf16.msra.mxu0 %v5961_v58  ;;  %4183 = vmatpush1.bf16.msra.mxu1 %v5964_v59  ;;  %v6053_v58 = vld [vmem:[%s6458_s25 + $0xeb4] ss:$48 sps:$4 sm:$0xff]   ;;  %v6056_v59 = vld [vmem:[%s6458_s25 + $0xebc] ss:$48 sps:$4 sm:$0xff]  }
 0x134   : > { %4061 = vmatprep.subr.bf16.mxu0 %v5969_v60  ;;  %4184 = vmatprep.subr.bf16.mxu1 %v5972_v61  ;;  %v6051_v60 = vld [vmem:[%s6458_s25 + $0xeb0] ss:$48 sps:$4 sm:$0xff]   ;;  %v6054_v61 = vld [vmem:[%s6458_s25 + $0xeb8] ss:$48 sps:$4 sm:$0xff]  }
 0x137   : > { %4062 = vmatpush1.bf16.msra.mxu0 %v5967_v62  ;;  %4185 = vmatpush1.bf16.msra.mxu1 %v5970_v63  ;;  %v6059_v62 = vld [vmem:[%s6458_s25 + $0xf14] ss:$48 sps:$4 sm:$0xff]   ;;  %v6062_v63 = vld [vmem:[%s6458_s25 + $0xf1c] ss:$48 sps:$4 sm:$0xff]  }
 0x138   : > { %4063 = vmatprep.subr.bf16.mxu0 %v5975_v2  ;;  %4186 = vmatprep.subr.bf16.mxu1 %v5978_v3  ;;  %v6057_v2 = vld [vmem:[%s6458_s25 + $0xf10] ss:$48 sps:$4 sm:$0xff]   ;;  %v6060_v3 = vld [vmem:[%s6458_s25 + $0xf18] ss:$48 sps:$4 sm:$0xff]  }
 0x13b   : > { %4064 = vmatpush1.bf16.msra.mxu0 %v5973_v4  ;;  %4187 = vmatpush1.bf16.msra.mxu1 %v5976_v5  ;;  %v6065_v4 = vld [vmem:[%s6458_s25 + $0xf74] ss:$48 sps:$4 sm:$0xff]   ;;  %v6068_v5 = vld [vmem:[%s6458_s25 + $0xf7c] ss:$48 sps:$4 sm:$0xff]  }
 0x13c   : > { %4065 = vmatprep.subr.bf16.mxu0 %v5981_v6  ;;  %4188 = vmatprep.subr.bf16.mxu1 %v5984_v7  ;;  %v6063_v6 = vld [vmem:[%s6458_s25 + $0xf70] ss:$48 sps:$4 sm:$0xff]   ;;  %v6066_v7 = vld [vmem:[%s6458_s25 + $0xf78] ss:$48 sps:$4 sm:$0xff]  }
 0x13f   : > { %4066 = vmatpush1.bf16.msra.mxu0 %v5979_v9  ;;  %4189 = vmatpush1.bf16.msra.mxu1 %v5982_v10  ;;  %v6071_v9 = vld [vmem:[%s6458_s25 + $0xfd4] ss:$48 sps:$4 sm:$0xff]   ;;  %v6074_v10 = vld [vmem:[%s6458_s25 + $0xfdc] ss:$48 sps:$4 sm:$0xff]  }
 0x140   : > { %4067 = vmatprep.subr.bf16.mxu0 %v5987_v11  ;;  %4190 = vmatprep.subr.bf16.mxu1 %v5990_v0  ;;  %v6069_v11 = vld [vmem:[%s6458_s25 + $0xfd0] ss:$48 sps:$4 sm:$0xff]   ;;  %v6072_v0 = vld [vmem:[%s6458_s25 + $0xfd8] ss:$48 sps:$4 sm:$0xff]  }
 0x143   : > { %4068 = vmatpush1.bf16.msra.mxu0 %v5985_v14  ;;  %4191 = vmatpush1.bf16.msra.mxu1 %v5988_v15  ;;  %v6077_v14 = vld [vmem:[%s6458_s25 + $0x1034] ss:$48 sps:$4 sm:$0xff]   ;;  %v6080_v15 = vld [vmem:[%s6458_s25 + $0x103c] ss:$48 sps:$4 sm:$0xff]  }
 0x144   : > { %4069 = vmatprep.subr.bf16.mxu0 %v5993_v17  ;;  %4192 = vmatprep.subr.bf16.mxu1 %v5996_v18  ;;  %v6075_v17 = vld [vmem:[%s6458_s25 + $0x1030] ss:$48 sps:$4 sm:$0xff]   ;;  %v6078_v18 = vld [vmem:[%s6458_s25 + $0x1038] ss:$48 sps:$4 sm:$0xff]  }
 0x147   : > { %4070 = vmatpush1.bf16.msra.mxu0 %v5991_v20  ;;  %4193 = vmatpush1.bf16.msra.mxu1 %v5994_v21  ;;  %v6083_v20 = vld [vmem:[%s6458_s25 + $0x1094] ss:$48 sps:$4 sm:$0xff]   ;;  %v6086_v21 = vld [vmem:[%s6458_s25 + $0x109c] ss:$48 sps:$4 sm:$0xff]  }
 0x148   : > { %4071 = vmatprep.subr.bf16.mxu0 %v5999_v22  ;;  %4194 = vmatprep.subr.bf16.mxu1 %v6002_v23  ;;  %v6081_v22 = vld [vmem:[%s6458_s25 + $0x1090] ss:$48 sps:$4 sm:$0xff]   ;;  %v6084_v23 = vld [vmem:[%s6458_s25 + $0x1098] ss:$48 sps:$4 sm:$0xff]  }
 0x14b   : > { %4072 = vmatpush1.bf16.msra.mxu0 %v5997_v13  ;;  %4195 = vmatpush1.bf16.msra.mxu1 %v6000_v24  ;;  %v6089_v13 = vld [vmem:[%s6458_s25 + $0x10f4] ss:$48 sps:$4 sm:$0xff]   ;;  %v6092_v24 = vld [vmem:[%s6458_s25 + $0x10fc] ss:$48 sps:$4 sm:$0xff]  }
 0x14c   : > { %4073 = vmatprep.subr.bf16.mxu0 %v6005_v25  ;;  %4196 = vmatprep.subr.bf16.mxu1 %v6008_v26  ;;  %v6087_v25 = vld [vmem:[%s6458_s25 + $0x10f0] ss:$48 sps:$4 sm:$0xff]   ;;  %v6090_v26 = vld [vmem:[%s6458_s25 + $0x10f8] ss:$48 sps:$4 sm:$0xff]  }
 0x14f   : > { %4074 = vmatpush1.bf16.msra.mxu0 %v6003_v27  ;;  %4197 = vmatpush1.bf16.msra.mxu1 %v6006_v28  ;;  %v6095_v27 = vld [vmem:[%s6458_s25 + $0x1154] ss:$48 sps:$4 sm:$0xff]   ;;  %v6098_v28 = vld [vmem:[%s6458_s25 + $0x115c] ss:$48 sps:$4 sm:$0xff]  }
 0x150   : > { %4084 = vmatprep.subr.bf16.mxu0 %v6011_v29  ;;  %4207 = vmatprep.subr.bf16.mxu1 %v6014_v30  ;;  %v6093_v29 = vld [vmem:[%s6458_s25 + $0x1150] ss:$48 sps:$4 sm:$0xff]   ;;  %v6096_v30 = vld [vmem:[%s6458_s25 + $0x1158] ss:$48 sps:$4 sm:$0xff]  }
 0x152   : > { %4076 = vmatmul.mubr.bf16.vlgmr.msra.gmra.mrb[4].mxu0 %v6610_v12  ;;  %4199 = vmatmul.mubr.bf16.vlgmr.msra.gmra.mrb[4].mxu1 %v6610_v12 }
 0x153   : > { %4085 = vmatpush1.bf16.msra.mxu0 %v6009_v32  ;;  %4208 = vmatpush1.bf16.msra.mxu1 %v6012_v33  ;;  %v6101_v32 = vld [vmem:[%s6458_s25 + $0x11b4] ss:$48 sps:$4 sm:$0xff]   ;;  %v6104_v33 = vld [vmem:[%s6458_s25 + $0x11bc] ss:$48 sps:$4 sm:$0xff]  }
 0x154   : > { %4086 = vmatprep.subr.bf16.mxu0 %v6017_v34  ;;  %4209 = vmatprep.subr.bf16.mxu1 %v6020_v35  ;;  %v6099_v34 = vld [vmem:[%s6458_s25 + $0x11b0] ss:$48 sps:$4 sm:$0xff]   ;;  %v6102_v35 = vld [vmem:[%s6458_s25 + $0x11b8] ss:$48 sps:$4 sm:$0xff]  }
 0x155   : > { %4116 = vmatprep.mubr.bf16.mxu0 %v6622_v16  ;;  %4239 = vmatprep.mubr.bf16.mxu1 %v6622_v16 }
 0x157   : > { %4087 = vmatpush1.bf16.msra.mxu0 %v6015_v36  ;;  %4210 = vmatpush1.bf16.msra.mxu1 %v6018_v37  ;;  %v6107_v36 = vld [vmem:[%s6458_s25 + $0x24] ss:$48 sps:$4 sm:$0xff]   ;;  %v6110_v37 = vld [vmem:[%s6458_s25 + $0x2c] ss:$48 sps:$4 sm:$0xff]  }
 0x158   : > { %4088 = vmatprep.subr.bf16.mxu0 %v6023_v38  ;;  %4211 = vmatprep.subr.bf16.mxu1 %v6026_v39  ;;  %v6105_v38 = vld [vmem:[%s6458_s25 + $0x20] ss:$48 sps:$4 sm:$0xff]   ;;  %v6108_v39 = vld [vmem:[%s6458_s25 + $0x28] ss:$48 sps:$4 sm:$0xff]  }
 0x15b   : > { %4089 = vmatpush1.bf16.msra.mxu0 %v6021_v40  ;;  %4212 = vmatpush1.bf16.msra.mxu1 %v6024_v41  ;;  %v6113_v40 = vld [vmem:[%s6458_s25 + $0x84] ss:$48 sps:$4 sm:$0xff]   ;;  %v6116_v41 = vld [vmem:[%s6458_s25 + $0x8c] ss:$48 sps:$4 sm:$0xff]  }
 0x15c   : > { %4090 = vmatprep.subr.bf16.mxu0 %v6029_v42  ;;  %4213 = vmatprep.subr.bf16.mxu1 %v6032_v43  ;;  %v6111_v42 = vld [vmem:[%s6458_s25 + $0x80] ss:$48 sps:$4 sm:$0xff]   ;;  %v6114_v43 = vld [vmem:[%s6458_s25 + $0x88] ss:$48 sps:$4 sm:$0xff]  }
 0x15f   : > { %4091 = vmatpush1.bf16.msra.mxu0 %v6027_v44  ;;  %4214 = vmatpush1.bf16.msra.mxu1 %v6030_v45  ;;  %v6119_v44 = vld [vmem:[%s6458_s25 + $0xe4] ss:$48 sps:$4 sm:$0xff]   ;;  %v6122_v45 = vld [vmem:[%s6458_s25 + $0xec] ss:$48 sps:$4 sm:$0xff]  }
 0x160   : > { %4092 = vmatprep.subr.bf16.mxu0 %v6035_v46  ;;  %4215 = vmatprep.subr.bf16.mxu1 %v6038_v47  ;;  %v6117_v46 = vld [vmem:[%s6458_s25 + $0xe0] ss:$48 sps:$4 sm:$0xff]   ;;  %v6120_v47 = vld [vmem:[%s6458_s25 + $0xe8] ss:$48 sps:$4 sm:$0xff]  }
 0x163   : > { %4093 = vmatpush1.bf16.msra.mxu0 %v6033_v48  ;;  %4216 = vmatpush1.bf16.msra.mxu1 %v6036_v49  ;;  %v6125_v48 = vld [vmem:[%s6458_s25 + $0x144] ss:$48 sps:$4 sm:$0xff]   ;;  %v6128_v49 = vld [vmem:[%s6458_s25 + $0x14c] ss:$48 sps:$4 sm:$0xff]  }
 0x164   : > { %4094 = vmatprep.subr.bf16.mxu0 %v6041_v50  ;;  %4217 = vmatprep.subr.bf16.mxu1 %v6044_v51  ;;  %v6123_v50 = vld [vmem:[%s6458_s25 + $0x140] ss:$48 sps:$4 sm:$0xff]   ;;  %v6126_v51 = vld [vmem:[%s6458_s25 + $0x148] ss:$48 sps:$4 sm:$0xff]  }
 0x167   : > { %4095 = vmatpush1.bf16.msra.mxu0 %v6039_v52  ;;  %4218 = vmatpush1.bf16.msra.mxu1 %v6042_v53  ;;  %v6134_v52 = vld [vmem:[%s6458_s25 + $0x1ac] ss:$48 sps:$4 sm:$0xff]   ;;  %v6129_v53 = vld [vmem:[%s6458_s25 + $0x1a0] ss:$48 sps:$4 sm:$0xff]  }
 0x168   : > { %4096 = vmatprep.subr.bf16.mxu0 %v6047_v54  ;;  %4219 = vmatprep.subr.bf16.mxu1 %v6050_v55  ;;  %v6132_v54 = vld [vmem:[%s6458_s25 + $0x1a8] ss:$48 sps:$4 sm:$0xff]   ;;  %v6137_v55 = vld [vmem:[%s6458_s25 + $0x204] ss:$48 sps:$4 sm:$0xff]  }
 0x16b   : > { %4097 = vmatpush1.bf16.msra.mxu0 %v6045_v56  ;;  %4220 = vmatpush1.bf16.msra.mxu1 %v6048_v57  ;;  %v6140_v56 = vld [vmem:[%s6458_s25 + $0x20c] ss:$48 sps:$4 sm:$0xff]   ;;  %v6135_v57 = vld [vmem:[%s6458_s25 + $0x200] ss:$48 sps:$4 sm:$0xff]  }
 0x16c   : > { %4098 = vmatprep.subr.bf16.mxu0 %v6053_v58  ;;  %4221 = vmatprep.subr.bf16.mxu1 %v6056_v59  ;;  %v6138_v58 = vld [vmem:[%s6458_s25 + $0x208] ss:$48 sps:$4 sm:$0xff]   ;;  %v6143_v59 = vld [vmem:[%s6458_s25 + $0x264] ss:$48 sps:$4 sm:$0xff]  }
 0x16f   : > { %4099 = vmatpush1.bf16.msra.mxu0 %v6051_v60  ;;  %4222 = vmatpush1.bf16.msra.mxu1 %v6054_v61  ;;  %v6146_v60 = vld [vmem:[%s6458_s25 + $0x26c] ss:$48 sps:$4 sm:$0xff]  }
 0x170   : > { %4100 = vmatprep.subr.bf16.mxu0 %v6059_v62  ;;  %4223 = vmatprep.subr.bf16.mxu1 %v6062_v63 }
 0x173   : > { %4101 = vmatpush1.bf16.msra.mxu0 %v6057_v2  ;;  %4224 = vmatpush1.bf16.msra.mxu1 %v6060_v3 }
 0x174   : > { %4102 = vmatprep.subr.bf16.mxu0 %v6065_v4  ;;  %4225 = vmatprep.subr.bf16.mxu1 %v6068_v5  ;;  %v6141_v5 = vld [vmem:[%s6458_s25 + $0x260] ss:$48 sps:$4 sm:$0xff]  }
 0x177   : > { %4103 = vmatpush1.bf16.msra.mxu0 %v6063_v6  ;;  %4226 = vmatpush1.bf16.msra.mxu1 %v6066_v7  ;;  %v6144_v6 = vld [vmem:[%s6458_s25 + $0x268] ss:$48 sps:$4 sm:$0xff]  }
 0x178   : > { %4104 = vmatprep.subr.bf16.mxu0 %v6071_v9  ;;  %4227 = vmatprep.subr.bf16.mxu1 %v6074_v10  ;;  %v6149_v10 = vld [vmem:[%s6458_s25 + $0x2c4] ss:$48 sps:$4 sm:$0xff]  }
 0x17b   : > { %4105 = vmatpush1.bf16.msra.mxu0 %v6069_v11  ;;  %4228 = vmatpush1.bf16.msra.mxu1 %v6072_v0  ;;  %v6152_v11 = vld [vmem:[%s6458_s25 + $0x2cc] ss:$48 sps:$4 sm:$0xff]   ;;  %v6147_v0 = vld [vmem:[%s6458_s25 + $0x2c0] ss:$48 sps:$4 sm:$0xff]  }
 0x17c   : > { %4106 = vmatprep.subr.bf16.mxu0 %v6077_v14  ;;  %4229 = vmatprep.subr.bf16.mxu1 %v6080_v15  ;;  %v6150_v14 = vld [vmem:[%s6458_s25 + $0x2c8] ss:$48 sps:$4 sm:$0xff]   ;;  %v6155_v15 = vld [vmem:[%s6458_s25 + $0x324] ss:$48 sps:$4 sm:$0xff]  }
 0x17f   : > { %4107 = vmatpush1.bf16.msra.mxu0 %v6075_v17  ;;  %4230 = vmatpush1.bf16.msra.mxu1 %v6078_v18  ;;  %v6158_v17 = vld [vmem:[%s6458_s25 + $0x32c] ss:$48 sps:$4 sm:$0xff]   ;;  %v6153_v18 = vld [vmem:[%s6458_s25 + $0x320] ss:$48 sps:$4 sm:$0xff]  }
 0x180   : > { %4108 = vmatprep.subr.bf16.mxu0 %v6083_v20  ;;  %4231 = vmatprep.subr.bf16.mxu1 %v6086_v21  ;;  %v6156_v20 = vld [vmem:[%s6458_s25 + $0x328] ss:$48 sps:$4 sm:$0xff]   ;;  %v6161_v21 = vld [vmem:[%s6458_s25 + $0x384] ss:$48 sps:$4 sm:$0xff]  }
 0x183   : > { %4109 = vmatpush1.bf16.msra.mxu0 %v6081_v22  ;;  %4232 = vmatpush1.bf16.msra.mxu1 %v6084_v23  ;;  %v6164_v22 = vld [vmem:[%s6458_s25 + $0x38c] ss:$48 sps:$4 sm:$0xff]   ;;  %v6159_v23 = vld [vmem:[%s6458_s25 + $0x380] ss:$48 sps:$4 sm:$0xff]  }
 0x184   : > { %4110 = vmatprep.subr.bf16.mxu0 %v6089_v13  ;;  %4233 = vmatprep.subr.bf16.mxu1 %v6092_v24  ;;  %v6162_v13 = vld [vmem:[%s6458_s25 + $0x388] ss:$48 sps:$4 sm:$0xff]   ;;  %v6167_v24 = vld [vmem:[%s6458_s25 + $0x3e4] ss:$48 sps:$4 sm:$0xff]  }
 0x187   : > { %4111 = vmatpush1.bf16.msra.mxu0 %v6087_v25  ;;  %4234 = vmatpush1.bf16.msra.mxu1 %v6090_v26  ;;  %v6170_v25 = vld [vmem:[%s6458_s25 + $0x3ec] ss:$48 sps:$4 sm:$0xff]   ;;  %v6165_v26 = vld [vmem:[%s6458_s25 + $0x3e0] ss:$48 sps:$4 sm:$0xff]  }
 0x188   : > { %4112 = vmatprep.subr.bf16.mxu0 %v6095_v27  ;;  %4235 = vmatprep.subr.bf16.mxu1 %v6098_v28  ;;  %v6168_v27 = vld [vmem:[%s6458_s25 + $0x3e8] ss:$48 sps:$4 sm:$0xff]   ;;  %v6173_v28 = vld [vmem:[%s6458_s25 + $0x444] ss:$48 sps:$4 sm:$0xff]  }
 0x18b   : > { %4113 = vmatpush1.bf16.msra.mxu0 %v6093_v29  ;;  %4236 = vmatpush1.bf16.msra.mxu1 %v6096_v30  ;;  %v6176_v29 = vld [vmem:[%s6458_s25 + $0x44c] ss:$48 sps:$4 sm:$0xff]   ;;  %v6171_v30 = vld [vmem:[%s6458_s25 + $0x440] ss:$48 sps:$4 sm:$0xff]  }
 0x18c   : > { %4114 = vmatprep.subr.bf16.mxu0 %v6101_v32  ;;  %4237 = vmatprep.subr.bf16.mxu1 %v6104_v33  ;;  %v6174_v32 = vld [vmem:[%s6458_s25 + $0x448] ss:$48 sps:$4 sm:$0xff]   ;;  %v6179_v33 = vld [vmem:[%s6458_s25 + $0x4a4] ss:$48 sps:$4 sm:$0xff]  }
 0x18f   : > { %4115 = vmatpush1.bf16.msra.mxu0 %v6099_v34  ;;  %4238 = vmatpush1.bf16.msra.mxu1 %v6102_v35  ;;  %v6182_v34 = vld [vmem:[%s6458_s25 + $0x4ac] ss:$48 sps:$4 sm:$0xff]   ;;  %v6177_v35 = vld [vmem:[%s6458_s25 + $0x4a0] ss:$48 sps:$4 sm:$0xff]  }
 0x190   : > { %4248 = vmatprep.subr.bf16.mxu0 %v6107_v36  ;;  %4371 = vmatprep.subr.bf16.mxu1 %v6110_v37  ;;  %v6180_v36 = vld [vmem:[%s6458_s25 + $0x4a8] ss:$48 sps:$4 sm:$0xff]   ;;  %v6185_v37 = vld [vmem:[%s6458_s25 + $0x504] ss:$48 sps:$4 sm:$0xff]  }
 0x192   : > { %4117 = vmatmul.mubr.bf16.vlgmr.msra.gmra.mrb[4].mxu0 %v6690_v19  ;;  %4240 = vmatmul.mubr.bf16.vlgmr.msra.gmra.mrb[4].mxu1 %v6690_v19 }
 0x193   : > { %4249 = vmatpush1.bf16.msra.mxu0 %v6105_v38  ;;  %4372 = vmatpush1.bf16.msra.mxu1 %v6108_v39  ;;  %v6188_v38 = vld [vmem:[%s6458_s25 + $0x50c] ss:$48 sps:$4 sm:$0xff]   ;;  %v6183_v39 = vld [vmem:[%s6458_s25 + $0x500] ss:$48 sps:$4 sm:$0xff]  }
 0x194   : > { %4250 = vmatprep.subr.bf16.mxu0 %v6113_v40  ;;  %4373 = vmatprep.subr.bf16.mxu1 %v6116_v41  ;;  %v6186_v40 = vld [vmem:[%s6458_s25 + $0x508] ss:$48 sps:$4 sm:$0xff]   ;;  %v6191_v41 = vld [vmem:[%s6458_s25 + $0x564] ss:$48 sps:$4 sm:$0xff]  }
 0x195   : > { %4280 = vmatprep.mubr.bf16.mxu0 %v6448_v1  ;;  %4403 = vmatprep.mubr.bf16.mxu1 %v6448_v1  ;;  %v6131_v1 = vld [vmem:[%s6458_s25 + $0x1a4] ss:$48 sps:$4 sm:$0xff]  }
 0x197   : > { %4251 = vmatpush1.bf16.msra.mxu0 %v6111_v42  ;;  %4374 = vmatpush1.bf16.msra.mxu1 %v6114_v43  ;;  %v6194_v42 = vld [vmem:[%s6458_s25 + $0x56c] ss:$48 sps:$4 sm:$0xff]   ;;  %v6189_v43 = vld [vmem:[%s6458_s25 + $0x560] ss:$48 sps:$4 sm:$0xff]  }
 0x198   : > { %4252 = vmatprep.subr.bf16.mxu0 %v6119_v44  ;;  %4375 = vmatprep.subr.bf16.mxu1 %v6122_v45  ;;  %v6192_v44 = vld [vmem:[%s6458_s25 + $0x568] ss:$48 sps:$4 sm:$0xff]   ;;  %v6197_v45 = vld [vmem:[%s6458_s25 + $0x5c4] ss:$48 sps:$4 sm:$0xff]  }
 0x19b   : > { %4253 = vmatpush1.bf16.msra.mxu0 %v6117_v46  ;;  %4376 = vmatpush1.bf16.msra.mxu1 %v6120_v47  ;;  %v6200_v46 = vld [vmem:[%s6458_s25 + $0x5cc] ss:$48 sps:$4 sm:$0xff]   ;;  %v6195_v47 = vld [vmem:[%s6458_s25 + $0x5c0] ss:$48 sps:$4 sm:$0xff]  }
 0x19c   : > { %4254 = vmatprep.subr.bf16.mxu0 %v6125_v48  ;;  %4377 = vmatprep.subr.bf16.mxu1 %v6128_v49  ;;  %v6198_v48 = vld [vmem:[%s6458_s25 + $0x5c8] ss:$48 sps:$4 sm:$0xff]   ;;  %v6203_v49 = vld [vmem:[%s6458_s25 + $0x624] ss:$48 sps:$4 sm:$0xff]  }
 0x19f   : > { %4255 = vmatpush1.bf16.msra.mxu0 %v6123_v50  ;;  %4378 = vmatpush1.bf16.msra.mxu1 %v6126_v51  ;;  %v6206_v50 = vld [vmem:[%s6458_s25 + $0x62c] ss:$48 sps:$4 sm:$0xff]   ;;  %v6201_v51 = vld [vmem:[%s6458_s25 + $0x620] ss:$48 sps:$4 sm:$0xff]  }
 0x1a0   : > { %4256 = vmatprep.subr.bf16.mxu0 %v6131_v1  ;;  %4379 = vmatprep.subr.bf16.mxu1 %v6134_v52  ;;  %v6204_v1 = vld [vmem:[%s6458_s25 + $0x628] ss:$48 sps:$4 sm:$0xff]   ;;  %v6209_v52 = vld [vmem:[%s6458_s25 + $0x684] ss:$48 sps:$4 sm:$0xff]  }
 0x1a3   : > { %4257 = vmatpush1.bf16.msra.mxu0 %v6129_v53  ;;  %4380 = vmatpush1.bf16.msra.mxu1 %v6132_v54  ;;  %v6212_v53 = vld [vmem:[%s6458_s25 + $0x68c] ss:$48 sps:$4 sm:$0xff]   ;;  %v6207_v54 = vld [vmem:[%s6458_s25 + $0x680] ss:$48 sps:$4 sm:$0xff]  }
 0x1a4   : > { %4258 = vmatprep.subr.bf16.mxu0 %v6137_v55  ;;  %4381 = vmatprep.subr.bf16.mxu1 %v6140_v56  ;;  %v6210_v55 = vld [vmem:[%s6458_s25 + $0x688] ss:$48 sps:$4 sm:$0xff]   ;;  %v6215_v56 = vld [vmem:[%s6458_s25 + $0x6e4] ss:$48 sps:$4 sm:$0xff]  }
 0x1a5   : > { %v6924_v61 = vpop.f32.mrb[0].mxu0  ;;  %v6926_v62 = vpop.f32.mrb[0].mxu1 }
 0x1a6   : > { %v6928_v63 = vpop.f32.mrb[1].mxu0  ;;  %v6930_v2 = vpop.f32.mrb[1].mxu1 }
 0x1a7   : > { %v3876_v3 = vpop.f32.mrb[2].mxu0  ;;  %v3999_v4 = vpop.f32.mrb[2].mxu1  ;;  %4259 = vmatpush1.bf16.msra.mxu0 %v6135_v57  ;;  %4382 = vmatpush1.bf16.msra.mxu1 %v6138_v58  ;;  %v6218_v57 = vld [vmem:[%s6458_s25 + $0x6ec] ss:$48 sps:$4 sm:$0xff]   ;;  %v6216_v58 = vld [vmem:[%s6458_s25 + $0x6e8] ss:$48 sps:$4 sm:$0xff]  }
 0x1a8   : > { %v3877_v7 = vpop.f32.mrb[3].mxu0  ;;  %v4000_v9 = vpop.f32.mrb[3].mxu1  ;;  %4260 = vmatprep.subr.bf16.mxu0 %v6143_v59  ;;  %4383 = vmatprep.subr.bf16.mxu1 %v6146_v60  ;;  %v6221_v59 = vld [vmem:[%s6458_s25 + $0x744] ss:$48 sps:$4 sm:$0xff]   ;;  %v6224_v60 = vld [vmem:[%s6458_s25 + $0x74c] ss:$48 sps:$4 sm:$0xff]  }
 0x1a9   : > { %v6219_v3 = vld [vmem:[%s6458_s25 + $0x740] ss:$48 sps:$4 sm:$0xff]   ;;  %v6222_v4 = vld [vmem:[%s6458_s25 + $0x748] ss:$48 sps:$4 sm:$0xff]   ;;  %v6233_v9 = vld [vmem:[%s6458_s25 + $0x804] ss:$48 sps:$4 sm:$0xff]  }
 0x1aa   : > { %v6228_v7 = vld [vmem:[%s6458_s25 + $0x7a8] ss:$48 sps:$4 sm:$0xff]  }
 0x1ab   : > { %4261 = vmatpush1.bf16.msra.mxu0 %v6141_v5  ;;  %4384 = vmatpush1.bf16.msra.mxu1 %v6144_v6  ;;  %v6230_v5 = vld [vmem:[%s6458_s25 + $0x7ac] ss:$48 sps:$4 sm:$0xff]   ;;  %v6225_v6 = vld [vmem:[%s6458_s25 + $0x7a0] ss:$48 sps:$4 sm:$0xff]  }
 0x1ac   : > { %4262 = vmatprep.subr.bf16.mxu0 %v6149_v10  ;;  %4385 = vmatprep.subr.bf16.mxu1 %v6152_v11  ;;  %v6236_v10 = vld [vmem:[%s6458_s25 + $0x80c] ss:$48 sps:$4 sm:$0xff]   ;;  %v6231_v11 = vld [vmem:[%s6458_s25 + $0x800] ss:$48 sps:$4 sm:$0xff]  }
 0x1af   : > { %4263 = vmatpush1.bf16.msra.mxu0 %v6147_v0  ;;  %4386 = vmatpush1.bf16.msra.mxu1 %v6150_v14  ;;  %v6234_v0 = vld [vmem:[%s6458_s25 + $0x808] ss:$48 sps:$4 sm:$0xff]   ;;  %v6239_v14 = vld [vmem:[%s6458_s25 + $0x864] ss:$48 sps:$4 sm:$0xff]  }
 0x1b0   : > { %4264 = vmatprep.subr.bf16.mxu0 %v6155_v15  ;;  %4387 = vmatprep.subr.bf16.mxu1 %v6158_v17  ;;  %v6242_v15 = vld [vmem:[%s6458_s25 + $0x86c] ss:$48 sps:$4 sm:$0xff]   ;;  %v6237_v17 = vld [vmem:[%s6458_s25 + $0x860] ss:$48 sps:$4 sm:$0xff]  }
 0x1b3   : > { %4265 = vmatpush1.bf16.msra.mxu0 %v6153_v18  ;;  %4388 = vmatpush1.bf16.msra.mxu1 %v6156_v20  ;;  %v6240_v18 = vld [vmem:[%s6458_s25 + $0x868] ss:$48 sps:$4 sm:$0xff]   ;;  %v6245_v20 = vld [vmem:[%s6458_s25 + $0x8c4] ss:$48 sps:$4 sm:$0xff]  }
 0x1b4   : > { %4266 = vmatprep.subr.bf16.mxu0 %v6161_v21  ;;  %4389 = vmatprep.subr.bf16.mxu1 %v6164_v22  ;;  %v6248_v21 = vld [vmem:[%s6458_s25 + $0x8cc] ss:$48 sps:$4 sm:$0xff]   ;;  %v6401_v22 = vmov 0  }
 0x1b5   : > { %5522 = vset.pattern.permute.xlu0 %v6401_v22  ;;  %v6330_v22 = vld [vmem:[%s6458_s25 + $0xe08] ss:$48 sps:$4 sm:$0xff]  }
 0x1b7   : > { %4267 = vmatpush1.bf16.msra.mxu0 %v6159_v23  ;;  %4390 = vmatpush1.bf16.msra.mxu1 %v6162_v13  ;;  %v4756_v23 = vld [vmem:[%s270_s8] sm:$0xff] }
 0x1b8   : > { %4268 = vmatprep.subr.bf16.mxu0 %v6167_v24  ;;  %4391 = vmatprep.subr.bf16.mxu1 %v6170_v25  ;;  %v6243_v13 = vld [vmem:[%s6458_s25 + $0x8c0] ss:$48 sps:$4 sm:$0xff]   ;;  %v6246_v24 = vld [vmem:[%s6458_s25 + $0x8c8] ss:$48 sps:$4 sm:$0xff]   ;;  %v6251_v25 = vld [vmem:[%s6458_s25 + $0x924] ss:$48 sps:$4 sm:$0xff]  }
 0x1b9   : > { %4759 = vperm.xlu0 %5522, %v4756_v23   ;;  %v6335_v23 = vld [vmem:[%s6458_s25 + $0xe64] ss:$48 sps:$4 sm:$0xff]  }
 0x1bb   : > { %4269 = vmatpush1.bf16.msra.mxu0 %v6165_v26  ;;  %4392 = vmatpush1.bf16.msra.mxu1 %v6168_v27  ;;  %v6254_v26 = vld [vmem:[%s6458_s25 + $0x92c] ss:$48 sps:$4 sm:$0xff]   ;;  %v6249_v27 = vld [vmem:[%s6458_s25 + $0x920] ss:$48 sps:$4 sm:$0xff]  }
 0x1bc   : > { %4270 = vmatprep.subr.bf16.mxu0 %v6173_v28  ;;  %4393 = vmatprep.subr.bf16.mxu1 %v6176_v29  ;;  %v6252_v28 = vld [vmem:[%s6458_s25 + $0x928] ss:$48 sps:$4 sm:$0xff]   ;;  %v6257_v29 = vld [vmem:[%s6458_s25 + $0x984] ss:$48 sps:$4 sm:$0xff]  }
 0x1bf   : > { %4271 = vmatpush1.bf16.msra.mxu0 %v6171_v30  ;;  %4394 = vmatpush1.bf16.msra.mxu1 %v6174_v32  ;;  %v6260_v30 = vld [vmem:[%s6458_s25 + $0x98c] ss:$48 sps:$4 sm:$0xff]   ;;  %v6255_v32 = vld [vmem:[%s6458_s25 + $0x980] ss:$48 sps:$4 sm:$0xff]  }
 0x1c0   : > { %4272 = vmatprep.subr.bf16.mxu0 %v6179_v33  ;;  %4395 = vmatprep.subr.bf16.mxu1 %v6182_v34  ;;  %v6258_v33 = vld [vmem:[%s6458_s25 + $0x988] ss:$48 sps:$4 sm:$0xff]   ;;  %v6263_v34 = vld [vmem:[%s6458_s25 + $0x9e4] ss:$48 sps:$4 sm:$0xff]  }
 0x1c3   : > { %4273 = vmatpush1.bf16.msra.mxu0 %v6177_v35  ;;  %4396 = vmatpush1.bf16.msra.mxu1 %v6180_v36  ;;  %v6266_v35 = vld [vmem:[%s6458_s25 + $0x9ec] ss:$48 sps:$4 sm:$0xff]   ;;  %v6261_v36 = vld [vmem:[%s6458_s25 + $0x9e0] ss:$48 sps:$4 sm:$0xff]  }
 0x1c4   : > { %4274 = vmatprep.subr.bf16.mxu0 %v6185_v37  ;;  %4397 = vmatprep.subr.bf16.mxu1 %v6188_v38  ;;  %v6264_v37 = vld [vmem:[%s6458_s25 + $0x9e8] ss:$48 sps:$4 sm:$0xff]   ;;  %v6269_v38 = vld [vmem:[%s6458_s25 + $0xa44] ss:$48 sps:$4 sm:$0xff]  }
 0x1c7   : > { %4275 = vmatpush1.bf16.msra.mxu0 %v6183_v39  ;;  %4398 = vmatpush1.bf16.msra.mxu1 %v6186_v40  ;;  %v6272_v39 = vld [vmem:[%s6458_s25 + $0xa4c] ss:$48 sps:$4 sm:$0xff]   ;;  %v6267_v40 = vld [vmem:[%s6458_s25 + $0xa40] ss:$48 sps:$4 sm:$0xff]  }
 0x1c8   : > { %4276 = vmatprep.subr.bf16.mxu0 %v6191_v41  ;;  %4399 = vmatprep.subr.bf16.mxu1 %v6194_v42  ;;  %v6270_v41 = vld [vmem:[%s6458_s25 + $0xa48] ss:$48 sps:$4 sm:$0xff]   ;;  %v6275_v42 = vld [vmem:[%s6458_s25 + $0xaa4] ss:$48 sps:$4 sm:$0xff]  }
 0x1cb   : > { %4277 = vmatpush1.bf16.msra.mxu0 %v6189_v43  ;;  %4400 = vmatpush1.bf16.msra.mxu1 %v6192_v44  ;;  %v6278_v43 = vld [vmem:[%s6458_s25 + $0xaac] ss:$48 sps:$4 sm:$0xff]   ;;  %v6273_v44 = vld [vmem:[%s6458_s25 + $0xaa0] ss:$48 sps:$4 sm:$0xff]  }
 0x1cc   : > { %4278 = vmatprep.subr.bf16.mxu0 %v6197_v45  ;;  %4401 = vmatprep.subr.bf16.mxu1 %v6200_v46  ;;  %v6276_v45 = vld [vmem:[%s6458_s25 + $0xaa8] ss:$48 sps:$4 sm:$0xff]   ;;  %v6281_v46 = vld [vmem:[%s6458_s25 + $0xb04] ss:$48 sps:$4 sm:$0xff]  }
 0x1cf   : > { %4279 = vmatpush1.bf16.msra.mxu0 %v6195_v47  ;;  %4402 = vmatpush1.bf16.msra.mxu1 %v6198_v48  ;;  %v6284_v47 = vld [vmem:[%s6458_s25 + $0xb0c] ss:$48 sps:$4 sm:$0xff]   ;;  %v6279_v48 = vld [vmem:[%s6458_s25 + $0xb00] ss:$48 sps:$4 sm:$0xff]  }
 0x1d0   : > { %4289 = vmatprep.subr.bf16.mxu0 %v6203_v49  ;;  %4412 = vmatprep.subr.bf16.mxu1 %v6206_v50  ;;  %v6282_v49 = vld [vmem:[%s6458_s25 + $0xb08] ss:$48 sps:$4 sm:$0xff]   ;;  %v6287_v50 = vld [vmem:[%s6458_s25 + $0xb64] ss:$48 sps:$4 sm:$0xff]  }
 0x1d2   : > { %4281 = vmatmul.mubr.bf16.vlgmr.msra.gmra.mrb[8].mxu0 %v6530_v8  ;;  %4404 = vmatmul.mubr.bf16.vlgmr.msra.gmra.mrb[8].mxu1 %v6530_v8  ;;  %v6213_v8 = vld [vmem:[%s6458_s25 + $0x6e0] ss:$48 sps:$4 sm:$0xff]  }
 0x1d3   : > { %4290 = vmatpush1.bf16.msra.mxu0 %v6201_v51  ;;  %4413 = vmatpush1.bf16.msra.mxu1 %v6204_v1  ;;  %v6290_v51 = vld [vmem:[%s6458_s25 + $0xb6c] ss:$48 sps:$4 sm:$0xff]   ;;  %v6285_v1 = vld [vmem:[%s6458_s25 + $0xb60] ss:$48 sps:$4 sm:$0xff]  }
 0x1d4   : > { %4291 = vmatprep.subr.bf16.mxu0 %v6209_v52  ;;  %4414 = vmatprep.subr.bf16.mxu1 %v6212_v53  ;;  %v6288_v52 = vld [vmem:[%s6458_s25 + $0xb68] ss:$48 sps:$4 sm:$0xff]   ;;  %v6293_v53 = vld [vmem:[%s6458_s25 + $0xbc4] ss:$48 sps:$4 sm:$0xff]  }
 0x1d5   : > { %4321 = vmatprep.mubr.bf16.mxu0 %v6563_v31  ;;  %4444 = vmatprep.mubr.bf16.mxu1 %v6563_v31  ;;  %v6227_v31 = vld [vmem:[%s6458_s25 + $0x7a4] ss:$48 sps:$4 sm:$0xff]  }
 0x1d7   : > { %4292 = vmatpush1.bf16.msra.mxu0 %v6207_v54  ;;  %4415 = vmatpush1.bf16.msra.mxu1 %v6210_v55  ;;  %v6296_v54 = vld [vmem:[%s6458_s25 + $0xbcc] ss:$48 sps:$4 sm:$0xff]   ;;  %v6291_v55 = vld [vmem:[%s6458_s25 + $0xbc0] ss:$48 sps:$4 sm:$0xff]  }
 0x1d8   : > { %4293 = vmatprep.subr.bf16.mxu0 %v6215_v56  ;;  %4416 = vmatprep.subr.bf16.mxu1 %v6218_v57  ;;  %v6294_v56 = vld [vmem:[%s6458_s25 + $0xbc8] ss:$48 sps:$4 sm:$0xff]   ;;  %v6299_v57 = vld [vmem:[%s6458_s25 + $0xc24] ss:$48 sps:$4 sm:$0xff]  }
 0x1db   : > { %4294 = vmatpush1.bf16.msra.mxu0 %v6213_v8  ;;  %4417 = vmatpush1.bf16.msra.mxu1 %v6216_v58  ;;  %v6302_v8 = vld [vmem:[%s6458_s25 + $0xc2c] ss:$48 sps:$4 sm:$0xff]   ;;  %v6297_v58 = vld [vmem:[%s6458_s25 + $0xc20] ss:$48 sps:$4 sm:$0xff]  }
 0x1dc   : > { %4295 = vmatprep.subr.bf16.mxu0 %v6221_v59  ;;  %4418 = vmatprep.subr.bf16.mxu1 %v6224_v60  ;;  %v6300_v59 = vld [vmem:[%s6458_s25 + $0xc28] ss:$48 sps:$4 sm:$0xff]   ;;  %v6305_v60 = vld [vmem:[%s6458_s25 + $0xc84] ss:$48 sps:$4 sm:$0xff]  }
 0x1df   : > { %4296 = vmatpush1.bf16.msra.mxu0 %v6219_v3  ;;  %4419 = vmatpush1.bf16.msra.mxu1 %v6222_v4  ;;  %v6308_v3 = vld [vmem:[%s6458_s25 + $0xc8c] ss:$48 sps:$4 sm:$0xff]   ;;  %v6303_v4 = vld [vmem:[%s6458_s25 + $0xc80] ss:$48 sps:$4 sm:$0xff]  }
 0x1e0   : > { %4297 = vmatprep.subr.bf16.mxu0 %v6227_v31  ;;  %4420 = vmatprep.subr.bf16.mxu1 %v6230_v5  ;;  %v6306_v31 = vld [vmem:[%s6458_s25 + $0xc88] ss:$48 sps:$4 sm:$0xff]   ;;  %v6311_v5 = vld [vmem:[%s6458_s25 + $0xce4] ss:$48 sps:$4 sm:$0xff]  }
 0x1e3   : > { %4298 = vmatpush1.bf16.msra.mxu0 %v6225_v6  ;;  %4421 = vmatpush1.bf16.msra.mxu1 %v6228_v7  ;;  %v6314_v6 = vld [vmem:[%s6458_s25 + $0xcec] ss:$48 sps:$4 sm:$0xff]   ;;  %v6312_v7 = vld [vmem:[%s6458_s25 + $0xce8] ss:$48 sps:$4 sm:$0xff]  }
 0x1e4   : > { %4299 = vmatprep.subr.bf16.mxu0 %v6233_v9  ;;  %4422 = vmatprep.subr.bf16.mxu1 %v6236_v10  ;;  %v6317_v9 = vld [vmem:[%s6458_s25 + $0xd44] ss:$48 sps:$4 sm:$0xff]   ;;  %v6320_v10 = vld [vmem:[%s6458_s25 + $0xd4c] ss:$48 sps:$4 sm:$0xff]  }
 0x1e7   : > { %4300 = vmatpush1.bf16.msra.mxu0 %v6231_v11  ;;  %4423 = vmatpush1.bf16.msra.mxu1 %v6234_v0  ;;  %v6315_v11 = vld [vmem:[%s6458_s25 + $0xd40] ss:$48 sps:$4 sm:$0xff]   ;;  %v6318_v0 = vld [vmem:[%s6458_s25 + $0xd48] ss:$48 sps:$4 sm:$0xff]  }
 0x1e8   : > { %4301 = vmatprep.subr.bf16.mxu0 %v6239_v14  ;;  %4424 = vmatprep.subr.bf16.mxu1 %v6242_v15  ;;  %v6326_v14 = vld [vmem:[%s6458_s25 + $0xdac] ss:$48 sps:$4 sm:$0xff]   ;;  %v6321_v15 = vld [vmem:[%s6458_s25 + $0xda0] ss:$48 sps:$4 sm:$0xff]  }
 0x1eb   : > { %4302 = vmatpush1.bf16.msra.mxu0 %v6237_v17  ;;  %4425 = vmatpush1.bf16.msra.mxu1 %v6240_v18  ;;  %v6324_v17 = vld [vmem:[%s6458_s25 + $0xda8] ss:$48 sps:$4 sm:$0xff]   ;;  %v6329_v18 = vld [vmem:[%s6458_s25 + $0xe04] ss:$48 sps:$4 sm:$0xff]  }
 0x1ec   : > { %4303 = vmatprep.subr.bf16.mxu0 %v6245_v20  ;;  %4426 = vmatprep.subr.bf16.mxu1 %v6248_v21  ;;  %v6332_v20 = vld [vmem:[%s6458_s25 + $0xe0c] ss:$48 sps:$4 sm:$0xff]   ;;  %v6327_v21 = vld [vmem:[%s6458_s25 + $0xe00] ss:$48 sps:$4 sm:$0xff]  }
 0x1ef   : > { %4304 = vmatpush1.bf16.msra.mxu0 %v6243_v13  ;;  %4427 = vmatpush1.bf16.msra.mxu1 %v6246_v24  ;;  %v6338_v13 = vld [vmem:[%s6458_s25 + $0xe6c] ss:$48 sps:$4 sm:$0xff]   ;;  %v6333_v24 = vld [vmem:[%s6458_s25 + $0xe60] ss:$48 sps:$4 sm:$0xff]  }
 0x1f0   : > { %4305 = vmatprep.subr.bf16.mxu0 %v6251_v25  ;;  %4428 = vmatprep.subr.bf16.mxu1 %v6254_v26  ;;  %v6336_v25 = vld [vmem:[%s6458_s25 + $0xe68] ss:$48 sps:$4 sm:$0xff]   ;;  %v6341_v26 = vld [vmem:[%s6458_s25 + $0xec4] ss:$48 sps:$4 sm:$0xff]  }
 0x1f3   : > { %4306 = vmatpush1.bf16.msra.mxu0 %v6249_v27  ;;  %4429 = vmatpush1.bf16.msra.mxu1 %v6252_v28  ;;  %v6344_v27 = vld [vmem:[%s6458_s25 + $0xecc] ss:$48 sps:$4 sm:$0xff]   ;;  %v6339_v28 = vld [vmem:[%s6458_s25 + $0xec0] ss:$48 sps:$4 sm:$0xff]  }
 0x1f4   : > { %4307 = vmatprep.subr.bf16.mxu0 %v6257_v29  ;;  %4430 = vmatprep.subr.bf16.mxu1 %v6260_v30  ;;  %v6342_v29 = vld [vmem:[%s6458_s25 + $0xec8] ss:$48 sps:$4 sm:$0xff]   ;;  %v6347_v30 = vld [vmem:[%s6458_s25 + $0xf24] ss:$48 sps:$4 sm:$0xff]  }
 0x1f7   : > { %4308 = vmatpush1.bf16.msra.mxu0 %v6255_v32  ;;  %4431 = vmatpush1.bf16.msra.mxu1 %v6258_v33  ;;  %v6350_v32 = vld [vmem:[%s6458_s25 + $0xf2c] ss:$48 sps:$4 sm:$0xff]   ;;  %v6345_v33 = vld [vmem:[%s6458_s25 + $0xf20] ss:$48 sps:$4 sm:$0xff]  }
 0x1f8   : > { %4309 = vmatprep.subr.bf16.mxu0 %v6263_v34  ;;  %4432 = vmatprep.subr.bf16.mxu1 %v6266_v35  ;;  %v6348_v34 = vld [vmem:[%s6458_s25 + $0xf28] ss:$48 sps:$4 sm:$0xff]   ;;  %v6353_v35 = vld [vmem:[%s6458_s25 + $0xf84] ss:$48 sps:$4 sm:$0xff]  }
 0x1fb   : > { %4310 = vmatpush1.bf16.msra.mxu0 %v6261_v36  ;;  %4433 = vmatpush1.bf16.msra.mxu1 %v6264_v37  ;;  %v6356_v36 = vld [vmem:[%s6458_s25 + $0xf8c] ss:$48 sps:$4 sm:$0xff]   ;;  %v6351_v37 = vld [vmem:[%s6458_s25 + $0xf80] ss:$48 sps:$4 sm:$0xff]  }
 0x1fc   : > { %4311 = vmatprep.subr.bf16.mxu0 %v6269_v38  ;;  %4434 = vmatprep.subr.bf16.mxu1 %v6272_v39  ;;  %v6354_v38 = vld [vmem:[%s6458_s25 + $0xf88] ss:$48 sps:$4 sm:$0xff]   ;;  %v6359_v39 = vld [vmem:[%s6458_s25 + $0xfe4] ss:$48 sps:$4 sm:$0xff]  }
 0x1ff   : > { %4312 = vmatpush1.bf16.msra.mxu0 %v6267_v40  ;;  %4435 = vmatpush1.bf16.msra.mxu1 %v6270_v41  ;;  %v6362_v40 = vld [vmem:[%s6458_s25 + $0xfec] ss:$48 sps:$4 sm:$0xff]   ;;  %v6357_v41 = vld [vmem:[%s6458_s25 + $0xfe0] ss:$48 sps:$4 sm:$0xff]  }
 0x200   : > { %4313 = vmatprep.subr.bf16.mxu0 %v6275_v42  ;;  %4436 = vmatprep.subr.bf16.mxu1 %v6278_v43  ;;  %v6360_v42 = vld [vmem:[%s6458_s25 + $0xfe8] ss:$48 sps:$4 sm:$0xff]   ;;  %v6365_v43 = vld [vmem:[%s6458_s25 + $0x1044] ss:$48 sps:$4 sm:$0xff]  }
 0x203   : > { %4314 = vmatpush1.bf16.msra.mxu0 %v6273_v44  ;;  %4437 = vmatpush1.bf16.msra.mxu1 %v6276_v45  ;;  %v6368_v44 = vld [vmem:[%s6458_s25 + $0x104c] ss:$48 sps:$4 sm:$0xff]   ;;  %v6363_v45 = vld [vmem:[%s6458_s25 + $0x1040] ss:$48 sps:$4 sm:$0xff]  }
 0x204   : > { %4315 = vmatprep.subr.bf16.mxu0 %v6281_v46  ;;  %4438 = vmatprep.subr.bf16.mxu1 %v6284_v47  ;;  %v6366_v46 = vld [vmem:[%s6458_s25 + $0x1048] ss:$48 sps:$4 sm:$0xff]   ;;  %v6371_v47 = vld [vmem:[%s6458_s25 + $0x10a4] ss:$48 sps:$4 sm:$0xff]  }
 0x207   : > { %4316 = vmatpush1.bf16.msra.mxu0 %v6279_v48  ;;  %4439 = vmatpush1.bf16.msra.mxu1 %v6282_v49  ;;  %v6374_v48 = vld [vmem:[%s6458_s25 + $0x10ac] ss:$48 sps:$4 sm:$0xff]   ;;  %v6369_v49 = vld [vmem:[%s6458_s25 + $0x10a0] ss:$48 sps:$4 sm:$0xff]  }
 0x208   : > { %4317 = vmatprep.subr.bf16.mxu0 %v6287_v50  ;;  %4440 = vmatprep.subr.bf16.mxu1 %v6290_v51  ;;  %v6372_v50 = vld [vmem:[%s6458_s25 + $0x10a8] ss:$48 sps:$4 sm:$0xff]   ;;  %v6377_v51 = vld [vmem:[%s6458_s25 + $0x1104] ss:$48 sps:$4 sm:$0xff]  }
 0x20b   : > { %4318 = vmatpush1.bf16.msra.mxu0 %v6285_v1  ;;  %4441 = vmatpush1.bf16.msra.mxu1 %v6288_v52  ;;  %v6380_v1 = vld [vmem:[%s6458_s25 + $0x110c] ss:$48 sps:$4 sm:$0xff]   ;;  %v6375_v52 = vld [vmem:[%s6458_s25 + $0x1100] ss:$48 sps:$4 sm:$0xff]  }
 0x20c   : > { %4319 = vmatprep.subr.bf16.mxu0 %v6293_v53  ;;  %4442 = vmatprep.subr.bf16.mxu1 %v6296_v54  ;;  %v6378_v53 = vld [vmem:[%s6458_s25 + $0x1108] ss:$48 sps:$4 sm:$0xff]   ;;  %v6383_v54 = vld [vmem:[%s6458_s25 + $0x1164] ss:$48 sps:$4 sm:$0xff]  }
 0x20f   : > { %4320 = vmatpush1.bf16.msra.mxu0 %v6291_v55  ;;  %4443 = vmatpush1.bf16.msra.mxu1 %v6294_v56  ;;  %v6386_v55 = vld [vmem:[%s6458_s25 + $0x116c] ss:$48 sps:$4 sm:$0xff]   ;;  %v6381_v56 = vld [vmem:[%s6458_s25 + $0x1160] ss:$48 sps:$4 sm:$0xff]  }
 0x210   : > { %4330 = vmatprep.subr.bf16.mxu0 %v6299_v57  ;;  %4453 = vmatprep.subr.bf16.mxu1 %v6302_v8  ;;  %v6384_v57 = vld [vmem:[%s6458_s25 + $0x1168] ss:$48 sps:$4 sm:$0xff]   ;;  %v6389_v8 = vld [vmem:[%s6458_s25 + $0x11c4] ss:$48 sps:$4 sm:$0xff]  }
 0x212   : > { %4322 = vmatmul.mubr.bf16.vlgmr.msra.gmra.mrb[8].mxu0 %v6610_v12  ;;  %4445 = vmatmul.mubr.bf16.vlgmr.msra.gmra.mrb[8].mxu1 %v6610_v12  ;;  %v6309_v12 = vld [vmem:[%s6458_s25 + $0xce0] ss:$48 sps:$4 sm:$0xff]  }
 0x213   : > { %4331 = vmatpush1.bf16.msra.mxu0 %v6297_v58  ;;  %4454 = vmatpush1.bf16.msra.mxu1 %v6300_v59  ;;  %v6392_v58 = vld [vmem:[%s6458_s25 + $0x11cc] ss:$48 sps:$4 sm:$0xff]   ;;  %v6387_v59 = vld [vmem:[%s6458_s25 + $0x11c0] ss:$48 sps:$4 sm:$0xff]  }
 0x214   : > { %4332 = vmatprep.subr.bf16.mxu0 %v6305_v60  ;;  %4455 = vmatprep.subr.bf16.mxu1 %v6308_v3  ;;  %v6390_v60 = vld [vmem:[%s6458_s25 + $0x11c8] ss:$48 sps:$4 sm:$0xff]   ;;  %v6402_v3 = vmov 0.0  }
 0x215   : > { %4362 = vmatprep.mubr.bf16.mxu0 %v6622_v16  ;;  %4485 = vmatprep.mubr.bf16.mxu1 %v6622_v16  ;;  %v6323_v16 = vld [vmem:[%s6458_s25 + $0xda4] ss:$48 sps:$4 sm:$0xff]  }
 0x217   : > { %4333 = vmatpush1.bf16.msra.mxu0 %v6303_v4  ;;  %4456 = vmatpush1.bf16.msra.mxu1 %v6306_v31  ;;  %v4494_v4 = vld [vmem:[%s266_s11] sm:$0xff] }
 0x218   : > { %4334 = vmatprep.subr.bf16.mxu0 %v6311_v5  ;;  %4457 = vmatprep.subr.bf16.mxu1 %v6314_v6 }
 0x21b   : > { %4335 = vmatpush1.bf16.msra.mxu0 %v6309_v12  ;;  %4458 = vmatpush1.bf16.msra.mxu1 %v6312_v7  ;;  %v4714_v12 = vlaneseq }
 0x21c   : > { %4336 = vmatprep.subr.bf16.mxu0 %v6317_v9  ;;  %4459 = vmatprep.subr.bf16.mxu1 %v6320_v10 }
 0x21d   : > { %v4715_v7 = vshrl.u32 %v4714_v12, 7 }
 0x21f   : > { %4337 = vmatpush1.bf16.msra.mxu0 %v6315_v11  ;;  %4460 = vmatpush1.bf16.msra.mxu1 %v6318_v0 }
 0x220   : > { %4338 = vmatprep.subr.bf16.mxu0 %v6323_v16  ;;  %4461 = vmatprep.subr.bf16.mxu1 %v6326_v14 }
 0x223   : > { %4339 = vmatpush1.bf16.msra.mxu0 %v6321_v15  ;;  %4462 = vmatpush1.bf16.msra.mxu1 %v6324_v17 }
 0x224   : > { %4340 = vmatprep.subr.bf16.mxu0 %v6329_v18  ;;  %4463 = vmatprep.subr.bf16.mxu1 %v6332_v20  ;;  %v4716_v18 = vsub.s32 0, %v4715_v7  ;;  %v4724_v20 = vsub.s32 2, %v4715_v7 }
 0x227   : > { %4341 = vmatpush1.bf16.msra.mxu0 %v6327_v21  ;;  %4464 = vmatpush1.bf16.msra.mxu1 %v6330_v22  ;;  %v4712_v21 = vld [vmem:[%s262_s15] sm:$0x3f]  ;;  %v4720_v22 = vsub.s32 1, %v4715_v7 }
 0x228   : > { %4342 = vmatprep.subr.bf16.mxu0 %v6335_v23  ;;  %4465 = vmatprep.subr.bf16.mxu1 %v6338_v13  ;;  %v4728_v23 = vsub.s32 3, %v4715_v7  ;;  %v4717_v13 = vrot.slane %v4712_v21, %v4716_v18 }
 0x22b   : > { %4343 = vmatpush1.bf16.msra.mxu0 %v6333_v24  ;;  %4466 = vmatpush1.bf16.msra.mxu1 %v6336_v25  ;;  %v4725_v24 = vrot.slane %v4712_v21, %v4724_v20 }
 0x22c   : > { %4344 = vmatprep.subr.bf16.mxu0 %v6341_v26  ;;  %4467 = vmatprep.subr.bf16.mxu1 %v6344_v27  ;;  %v4721_v27 = vrot.slane %v4712_v21, %v4720_v22 }
 0x22f   : > { %4345 = vmatpush1.bf16.msra.mxu0 %v6339_v28  ;;  %4468 = vmatpush1.bf16.msra.mxu1 %v6342_v29  ;;  %v4729_v28 = vrot.slane %v4712_v21, %v4728_v23 }
 0x230   : > { %4346 = vmatprep.subr.bf16.mxu0 %v6347_v30  ;;  %4469 = vmatprep.subr.bf16.mxu1 %v6350_v32 }
 0x233   : > { %4347 = vmatpush1.bf16.msra.mxu0 %v6345_v33  ;;  %4470 = vmatpush1.bf16.msra.mxu1 %v6348_v34 }
 0x234   : > { %4348 = vmatprep.subr.bf16.mxu0 %v6353_v35  ;;  %4471 = vmatprep.subr.bf16.mxu1 %v6356_v36 }
 0x237   : > { %4349 = vmatpush1.bf16.msra.mxu0 %v6351_v37  ;;  %4472 = vmatpush1.bf16.msra.mxu1 %v6354_v38 }
 0x238   : > { %4350 = vmatprep.subr.bf16.mxu0 %v6359_v39  ;;  %4473 = vmatprep.subr.bf16.mxu1 %v6362_v40  ;;  %v4760_v40 = vpop.permute.xlu0 %4759 }
 0x23b   : > { %4351 = vmatpush1.bf16.msra.mxu0 %v6357_v41  ;;  %4474 = vmatpush1.bf16.msra.mxu1 %v6360_v42 }
 0x23c   : > { %4352 = vmatprep.subr.bf16.mxu0 %v6365_v43  ;;  %4475 = vmatprep.subr.bf16.mxu1 %v6368_v44 }
 0x23f   : > { %4353 = vmatpush1.bf16.msra.mxu0 %v6363_v45  ;;  %4476 = vmatpush1.bf16.msra.mxu1 %v6366_v46 }
 0x240   : > { %4354 = vmatprep.subr.bf16.mxu0 %v6371_v47  ;;  %4477 = vmatprep.subr.bf16.mxu1 %v6374_v48 }
 0x243   : > { %4355 = vmatpush1.bf16.msra.mxu0 %v6369_v49  ;;  %4478 = vmatpush1.bf16.msra.mxu1 %v6372_v50  ;;  %v4732_v49 = vsub.s32 4, %v4715_v7  ;;  %v4736_v50 = vsub.s32 5, %v4715_v7 }
 0x244   : > { %4356 = vmatprep.subr.bf16.mxu0 %v6377_v51  ;;  %4479 = vmatprep.subr.bf16.mxu1 %v6380_v1 }
 0x245   : > { %v4733_v51 = vrot.slane %v4712_v21, %v4732_v49 }
 0x247   : > { %4357 = vmatpush1.bf16.msra.mxu0 %v6375_v52  ;;  %4480 = vmatpush1.bf16.msra.mxu1 %v6378_v53  ;;  %v4737_v52 = vrot.slane %v4712_v21, %v4736_v50 }
 0x248   : > { %4358 = vmatprep.subr.bf16.mxu0 %v6383_v54  ;;  %4481 = vmatprep.subr.bf16.mxu1 %v6386_v55 }
 0x24b   : > { %4359 = vmatpush1.bf16.msra.mxu0 %v6381_v56  ;;  %4482 = vmatpush1.bf16.msra.mxu1 %v6384_v57 }
 0x24c   : > { %4360 = vmatprep.subr.bf16.mxu0 %v6389_v8  ;;  %4483 = vmatprep.subr.bf16.mxu1 %v6392_v58 }
 0x24f   : > { %4361 = vmatpush1.bf16.msra.mxu0 %v6387_v59  ;;  %4484 = vmatpush1.bf16.msra.mxu1 %v6390_v60 }
 0x250   : > { %4499 = vmatprep.subr.mxu0 %v6928_v63  ;;  %4570 = vmatprep.subr.mxu1 %v6930_v2 }
 0x252   : > { %4363 = vmatmul.mubr.bf16.vlgmr.msra.gmra.mrb[8].mxu0 %v6690_v19  ;;  %4486 = vmatmul.mubr.bf16.vlgmr.msra.gmra.mrb[8].mxu1 %v6690_v19 }
 0x253   : > { %4500 = vmatpush1.msra.mxu0 %v6924_v61  ;;  %4571 = vmatpush1.msra.mxu1 %v6926_v62 }
 0x254   : > { %4563 = vmatprep.mubr.f32.mxu0 %v6402_v3  ;;  %4634 = vmatprep.mubr.f32.mxu1 %v6402_v3 }
 0x25a   : > { %5456 = vmatmul.mubr.msk.f32.vlgmr.msra.gmra.mrb[12].mxu0 %vm4495_vm0, %v4494_v4  ;;  %5457 = vmatmul.mubr.msk.f32.vlgmr.msra.gmra.mrb[12].mxu1 %vm4495_vm0, %v4494_v4 }
 0x25b   : > { %4705 = vmatprep.mubr.f32.mxu0 %v6402_v3 }
 0x265   : > { %v4118_v63 = vpop.f32.mrb[4].mxu0  ;;  %v4241_v19 = vpop.f32.mrb[4].mxu1 }
 0x266   : > { %v4120_v2 = vpop.f32.mrb[5].mxu0  ;;  %v4243_v61 = vpop.f32.mrb[5].mxu1 }
 0x267   : > { %v4122_v31 = vpop.f32.mrb[6].mxu0  ;;  %v4245_v62 = vpop.f32.mrb[6].mxu1  ;;  %4641 = vmatprep.subr.mxu0 %v4120_v2 }
 0x268   : > { %v4123_v5 = vpop.f32.mrb[7].mxu0  ;;  %v4246_v6 = vpop.f32.mrb[7].mxu1  ;;  %4642 = vmatpush1.msra.mxu0 %v4118_v63 }
 0x269   : > { %5458 = vmatmul.mubr.msk.f32.vlgmr.msra.gmra.mrb[14].mxu0 %vm4495_vm0, %v4494_v4 }
 0x325   : > { %v4364_v9 = vpop.f32.mrb[8].mxu0  ;;  %v4487_v10 = vpop.f32.mrb[8].mxu1 }
 0x326   : > { %v4366_v11 = vpop.f32.mrb[9].mxu0  ;;  %v4489_v0 = vpop.f32.mrb[9].mxu1 }
 0x327   : > { %v4368_v16 = vpop.f32.mrb[10].mxu0  ;;  %v4491_v14 = vpop.f32.mrb[10].mxu1 }
 0x328   : > { %v4369_v15 = vpop.f32.mrb[11].mxu0  ;;  %v4492_v17 = vpop.f32.mrb[11].mxu1 }
 0x32d   : > { %v4565_v25 = vpop.f32.mrb[12].mxu0  ;;  %v4636_v26 = vpop.f32.mrb[12].mxu1 }
 0x32e   : > { %v4566_v29 = vadd.f32 %v4565_v25, %v4241_v19  ;;  %v4637_v30 = vadd.f32 %v4636_v26, %v4364_v9  ;;  %v4567_v32 = vpop.f32.mrb[13].mxu0  ;;  %v4638_v33 = vpop.f32.mrb[13].mxu1 }
 0x32f   : > { %v4568_v34 = vadd.f32 %v4567_v32, %v4243_v61  ;;  %v4639_v35 = vadd.f32 %v4638_v33, %v4366_v11 }
 0x330   : > { %v4744_v36 = vadd.f32 %v4717_v13, %v4566_v29  ;;  %v4746_v37 = vadd.f32 %v4725_v24, %v4637_v30 }
 0x331   : > { %v4745_v38 = vadd.f32 %v4721_v27, %v4568_v34  ;;  %v4747_v39 = vadd.f32 %v4729_v28, %v4639_v35 }
 0x332   : > { %v4750_v41 = vmax.f32 %v4744_v36, 0.0  ;;  %v4752_v42 = vmax.f32 %v4746_v37, 0.0 }
 0x333   : > { %v4751_v43 = vmax.f32 %v4745_v38, 0.0  ;;  %v4753_v44 = vmax.f32 %v4747_v39, 0.0 }
 0x334   : > { %v4762_v45 = vmul.f32 %v4760_v40, %v4750_v41  ;;  %v4764_v46 = vmul.f32 %v4760_v40, %v4752_v42 }
 0x335   : > { %v4763_v47 = vmul.f32 %v4760_v40, %v4751_v43  ;;  %v4765_v48 = vmul.f32 %v4760_v40, %v4753_v44 }
 0x336   : > { %4768 = vst [vmem:[%s275_s21] sm:$0xff] %v4762_v45  ;;  %4770 = vst [vmem:[%s275_s21 + $0x10] sm:$0xff] %v4764_v46 }
 0x337   : > { %4769 = vst [vmem:[%s275_s21 + $0x8] sm:$0xff] %v4763_v47  ;;  %4771 = vst [vmem:[%s275_s21 + $0x18] sm:$0xff] %v4765_v48 }
 0x33c   : > { %v4707_v1 = vpop.f32.mrb[14].mxu0 }
 0x33d   : > { %v4708_v53 = vadd.f32 %v4707_v1, %v4487_v10  ;;  %v4709_v54 = vpop.f32.mrb[15].mxu0 }
 0x33e   : > { %v4710_v55 = vadd.f32 %v4709_v54, %v4489_v0 }
 0x33f   : > { %v4748_v56 = vadd.f32 %v4733_v51, %v4708_v53 }
 0x340   : > { %v4749_v57 = vadd.f32 %v4737_v52, %v4710_v55 }
 0x341   : > { %v4754_v8 = vmax.f32 %v4748_v56, 0.0 }
 0x342   : > { %v4755_v58 = vmax.f32 %v4749_v57, 0.0 }
 0x343   : > { %v4766_v59 = vmul.f32 %v4760_v40, %v4754_v8 }
 0x344   : > { %v4767_v60 = vmul.f32 %v4760_v40, %v4755_v58 }
 0x345   : > { %4772 = vst [vmem:[%s275_s21 + $0x20] sm:$0xff] %v4766_v59 }
 0x346   : > { %4773 = vst [vmem:[%s275_s21 + $0x28] sm:$0xff] %v4767_v60 }
 0x347 PF: > { %s15_s18 = sadd.s32 1, %s6399_s18  }
 0x348   : > { %p12_p4 = scmp.ge.s32.totalorder %s15_s18, 4  }
 0x34a   :  { %14 = sbr.rel (!%p12_p4) target bundleno = 1 (0x1), region = 79 }

</bundles_post_ra>
